<compile_context>
chip_gen: v7x
topology: tpu7x:2x2x1
jax: 0.10.0
libtpu: 0.0.40
codegen_flags: <defaults>
</compile_context>

<pallas_src>
import jax
import jax.numpy as jnp
from jax import lax
from jax.experimental import pallas as pl
from jax.experimental.pallas import tpu as pltpu


def _round_up(x, m):
    return (x + m - 1) // m * m


def _dwsep_kernel(x_hbm, wdw_ref, wpw_ref, shift_ref, o_ref, xbuf, sem):
    """Grid = (N, n_strips).  One (batch, output-row-strip) per step.

    x_hbm    : (N, Hpad, Wp, Cp)       padded NHWC input, left in HBM (pl.ANY)
    wdw_ref  : (K, K, Cp)              depthwise weights (constant block)
    wpw_ref  : (Cp, Cop)               pointwise weights, BN scale folded in
    shift_ref: (1, Cop)                folded BN shift  (beta - mean*scale)
    o_ref    : (1, TH, Wo, Cop)        output strip
    xbuf     : VMEM (2, TH+K-1, Wp, Cp)  double-buffered input strip (+halo)
    sem      : DMA semaphores (2,)
    """
    n = pl.program_id(0)
    h = pl.program_id(1)
    n_strips = pl.num_programs(1)

    TH = o_ref.shape[1]
    Wo = o_ref.shape[2]
    K = wdw_ref.shape[0]
    halo_rows = TH + K - 1
    slot = h % 2

    def start_fetch(strip_idx, sl):
        row0 = pl.multiple_of(strip_idx * TH, TH)
        pltpu.make_async_copy(
            x_hbm.at[n, pl.ds(row0, halo_rows)], xbuf.at[sl], sem.at[sl]
        ).start()

    # Prime the pipeline at the first strip of every batch element.  The strip
    # axis is "arbitrary", so for a given n the strips run h = 0..n_strips-1
    # sequentially on one core and the double-buffer chain is well defined.
    @pl.when(h == 0)
    def _():
        start_fetch(0, 0)

    # Prefetch the next strip into the other buffer while we compute this one.
    @pl.when(h + 1 < n_strips)
    def _():
        start_fetch(h + 1, 1 - slot)

    # Wait for the current strip's DMA (descriptor only needs matching shapes).
    pltpu.make_async_copy(
        x_hbm.at[n, pl.ds(0, halo_rows)], xbuf.at[slot], sem.at[slot]
    ).wait()

    x_vm = xbuf.at[slot]                         # (TH+K-1, Wp, Cp) ref view
    Cp = x_vm.shape[-1]

    # Depthwise conv: materialize only K width-shifted slabs (the sublane-
    # misaligned accesses), then take cheap row slices for the K vertical taps
    # -> K relayouts instead of K*K.
    acc = jnp.zeros((TH, Wo, Cp), jnp.float32)
    for kw in range(K):                          # K static -> unrolled
        slab = x_vm[:, kw:kw + Wo, :].astype(jnp.float32)   # (TH+K-1, Wo, Cp)
        for kh in range(K):
            acc = acc + slab[kh:kh + TH] * wdw_ref[kh, kw, :]

    # Pointwise 1x1 conv == channel matmul on the MXU.  BN scale is already
    # folded into wpw; only the shift add remains.
    # (For bf16 models: cast acc / wpw operands to bf16 here, keep
    #  preferred_element_type=jnp.float32, for ~2-3x MXU throughput on v6e/v7x.)
    y = jnp.dot(acc.reshape(TH * Wo, Cp), wpw_ref[...],
                preferred_element_type=jnp.float32)
    y = y + shift_ref[0]

    o_ref[0] = y.reshape(TH, Wo, -1).astype(o_ref.dtype)


def depthwise_separable_conv(x_nchw, w_dw, w_pw, gamma, beta, run_mean, run_var,
                             *, padding=0, eps=1e-5, strip_rows=None):
    """Depthwise separable conv + inference-mode BatchNorm.  NCHW in / NCHW out.

    x_nchw: (N, C, H, W)   w_dw: (C, 1, K, K)   w_pw: (Co, C, 1, 1)
    """
    N, C, H, W = x_nchw.shape
    K = w_dw.shape[-1]
    Co = w_pw.shape[0]
    P = padding
    Ho = H + 2 * P - K + 1
    Wo = W + 2 * P - K + 1
    assert Ho >= 1 and Wo >= 1, "invalid kernel/padding for this input size"

    # Output-row strip size (>=64-128 rows for real image sizes).
    TH = strip_rows if strip_rows is not None else min(Ho, 128)
    TH = max(1, min(TH, Ho))
    nH = pl.cdiv(Ho, TH)

    # Lane-dense channels: pad C / Co up to multiples of 128 so channels fill
    # the 128-lane axis, the matmul contraction is MXU-aligned and output
    # stores are unmasked.
    Cp = _round_up(C, 128)
    Cop = _round_up(Co, 128)

    # --- glue: layout & parameter prep (plain JAX, runs once per call) ---
    # TODO(synk): if the surrounding model keeps NHWC activations, drop the two
    # NCHW<->NHWC transposes (and fuse the pad) to save two full HBM round trips.
    x_nhwc = jnp.transpose(x_nchw, (0, 2, 3, 1))                 # (N, H, W, C)
    pad_top = P
    pad_bot = nH * TH + K - 1 - P - H          # bottom halo + ragged strip rows
    x_pad = jnp.pad(x_nhwc, ((0, 0), (pad_top, pad_bot), (P, P), (0, Cp - C)))
    Wp = x_pad.shape[2]

    scale = gamma / jnp.sqrt(run_var + eps)                      # (Co,)
    shift = beta - run_mean * scale                              # (Co,)
    wdw = jnp.transpose(w_dw[:, 0, :, :], (1, 2, 0))             # (K, K, C)
    wdw = jnp.pad(wdw, ((0, 0), (0, 0), (0, Cp - C))).astype(jnp.float32)
    # Fold BN scale into the pointwise weights (removes a per-pixel VPU mul).
    wpw = jnp.transpose(w_pw[:, :, 0, 0], (1, 0)) * scale[None, :]   # (C, Co)
    wpw = jnp.pad(wpw, ((0, Cp - C), (0, Cop - Co))).astype(jnp.float32)
    shift = jnp.pad(shift, (0, Cop - Co)).reshape(1, Cop).astype(jnp.float32)

    # Explicit VMEM budget (double-buffered strips + output blocks + weights +
    # compute temps) with headroom, clamped under v7x's 64 MiB physical VMEM so
    # the compiler never silently drops pipeline depth.
    in_it = x_pad.dtype.itemsize
    out_it = jnp.dtype(x_nchw.dtype).itemsize
    strip_b = (TH + K - 1) * Wp * Cp * in_it
    out_b = TH * Wo * Cop * out_it
    w_b = (K * K * Cp + Cp * Cop + Cop) * 4
    tmp_b = TH * Wo * (Cp + Cop) * 4
    vmem_limit = int(min(max(2 * strip_b + 2 * out_b + w_b + 3 * tmp_b + (8 << 20),
                             32 << 20), 48 << 20))

    out_nhwc = pl.pallas_call(
        _dwsep_kernel,
        out_shape=jax.ShapeDtypeStruct((N, nH * TH, Wo, Cop), x_nchw.dtype),
        grid_spec=pltpu.PrefetchScalarGridSpec(
            num_scalar_prefetch=0,
            grid=(N, nH),
            in_specs=[
                pl.BlockSpec(memory_space=pl.ANY),                  # stays in HBM
                pl.BlockSpec((K, K, Cp), lambda n, h: (0, 0, 0)),
                pl.BlockSpec((Cp, Cop), lambda n, h: (0, 0)),
                pl.BlockSpec((1, Cop), lambda n, h: (0, 0)),
            ],
            out_specs=pl.BlockSpec((1, TH, Wo, Cop),
                                   lambda n, h: (n, h, 0, 0)),
            scratch_shapes=[
                pltpu.VMEM((2, TH + K - 1, Wp, Cp), x_pad.dtype),
                pltpu.SemaphoreType.DMA((2,)),
            ]),
        compiler_params=pltpu.CompilerParams(
            # N is megacore-parallel; the strip axis stays "arbitrary" because
            # the manual input DMA is double-buffered across strips.
            dimension_semantics=("parallel", "arbitrary"),
            vmem_limit_bytes=vmem_limit),
    )(x_pad, wdw, wpw, shift)

    out = out_nhwc[:, :Ho, :, :Co]                      # crop strip/channel pad
    return jnp.transpose(out, (0, 3, 1, 2))             # back to NCHW


def _reference(x, w_dw, w_pw, gamma, beta, run_mean, run_var, *, padding=0, eps=1e-5):
    C = x.shape[1]
    y = lax.conv_general_dilated(
        x, w_dw, window_strides=(1, 1),
        padding=((padding, padding), (padding, padding)),
        feature_group_count=C,
        dimension_numbers=("NCHW", "OIHW", "NCHW"))
    y = lax.conv_general_dilated(
        y, w_pw, window_strides=(1, 1), padding=((0, 0), (0, 0)),
        dimension_numbers=("NCHW", "OIHW", "NCHW"))
    inv = 1.0 / jnp.sqrt(run_var + eps)
    y = (y - run_mean[None, :, None, None]) * inv[None, :, None, None]
    y = y * gamma[None, :, None, None] + beta[None, :, None, None]
    return y


if __name__ == "__main__":
    # Small deterministic example: in_channels=4, out_channels=8, k=3, p=1.
    N, C, H, W = 2, 4, 16, 16
    Co, K, P = 8, 3, 1

    key = jax.random.PRNGKey(0)
    k1, k2, k3, k4, k5, k6, k7 = jax.random.split(key, 7)
    x = jax.random.normal(k1, (N, C, H, W), dtype=jnp.float32)
    w_dw = jax.random.normal(k2, (C, 1, K, K), dtype=jnp.float32) * 0.1
    w_pw = jax.random.normal(k3, (Co, C, 1, 1), dtype=jnp.float32) * 0.1
    # Non-trivial BatchNorm running stats / affine (inference mode).
    gamma = 1.0 + 0.1 * jax.random.normal(k4, (Co,), dtype=jnp.float32)
    beta = 0.1 * jax.random.normal(k5, (Co,), dtype=jnp.float32)
    run_mean = 0.1 * jax.random.normal(k6, (Co,), dtype=jnp.float32)
    run_var = 0.5 + 0.5 * jnp.abs(jax.random.normal(k7, (Co,), dtype=jnp.float32))

    out = depthwise_separable_conv(x, w_dw, w_pw, gamma, beta, run_mean, run_var,
                                   padding=P, strip_rows=8)
    out = jax.block_until_ready(out)

    ref = _reference(x, w_dw, w_pw, gamma, beta, run_mean, run_var, padding=P)
    assert out.shape == (N, Co, H, W)
    assert jnp.allclose(out, ref, rtol=1e-4, atol=1e-4)

    print("KERNEL_OK")
</pallas_src>

<mosaic_0001>
module attributes {stable_mosaic.version = 11 : i64} {
  func.func @_dwsep_kernel(%arg0: i32, %arg1: i32, %arg2: memref<2x18x18x128xf32, #tpu.memory_space<any>>, %arg3: memref<3x3x128xf32, #tpu.memory_space<vmem>>, %arg4: memref<128x128xf32, #tpu.memory_space<vmem>>, %arg5: memref<1x128xf32, #tpu.memory_space<vmem>>, %arg6: memref<1x8x16x128xf32, #tpu.memory_space<vmem>>, %arg7: memref<2x10x18x128xf32, #tpu.memory_space<vmem>>, %arg8: memref<2x!tpu.dma_semaphore, #tpu.memory_space<semaphore_mem>>) attributes {dimension_semantics = [#tpu.dimension_semantics<parallel>, #tpu.dimension_semantics<arbitrary>], iteration_bounds = array<i64: 2, 2>, scalar_prefetch = 0 : i64, scratch_operands = 2 : i64, tpu.core_type = #tpu.core_type<tc>, window_params = [{}, {pipeline_mode = #tpu.pipeline_mode<synchronous>, transform_indices = @transform_1, window_bounds = array<i64: 3, 3, 128>}, {pipeline_mode = #tpu.pipeline_mode<synchronous>, transform_indices = @transform_2, window_bounds = array<i64: 128, 128>}, {pipeline_mode = #tpu.pipeline_mode<synchronous>, transform_indices = @transform_3, window_bounds = array<i64: 1, 128>}, {transform_indices = @transform_4, window_bounds = array<i64: 1, 8, 16, 128>}]} {
    %c2_i32 = arith.constant 2 : i32
    %c0_i32 = arith.constant 0 : i32
    %0 = arith.cmpi eq, %c2_i32, %c0_i32 : i32
    %c1_i32 = arith.constant 1 : i32
    %1 = arith.select %0, %c1_i32, %c2_i32 : i32
    %2 = arith.remsi %arg1, %1 : i32
    %c0_i32_0 = arith.constant 0 : i32
    %3 = arith.cmpi ne, %2, %c0_i32_0 : i32
    %c0_i32_1 = arith.constant 0 : i32
    %4 = arith.cmpi slt, %2, %c0_i32_1 : i32
    %c0_i32_2 = arith.constant 0 : i32
    %5 = arith.cmpi slt, %1, %c0_i32_2 : i32
    %6 = arith.xori %4, %5 : i1
    %7 = arith.andi %6, %3 : i1
    %8 = arith.addi %2, %1 : i32
    %9 = arith.select %7, %8, %2 : i32
    %c0_i32_3 = arith.constant 0 : i32
    %10 = arith.cmpi eq, %arg1, %c0_i32_3 : i32
    %11 = arith.extui %10 : i1 to i32
    %c0_i32_4 = arith.constant 0 : i32
    %12 = arith.cmpi ne, %11, %c0_i32_4 : i32
    scf.if %12 {
      %c0_i32_65 = arith.constant 0 : i32
      %108 = tpu.assume_multiple %c0_i32_65, 8 : i32
      %c0_i32_66 = arith.constant 0 : i32
      %c0_i32_67 = arith.constant 0 : i32
      %c0_i32_68 = arith.constant 0 : i32
      %c0_i32_69 = arith.constant 0 : i32
      %109 = tpu.memref_slice %arg2[%arg0, %108, %c0_i32_68, %c0_i32_69] : memref<2x18x18x128xf32, #tpu.memory_space<any>> -> memref<1x10x18x128xf32, #tpu.memory_space<any>>
      %110 = tpu.memref_squeeze %109 : memref<1x10x18x128xf32, #tpu.memory_space<any>> -> memref<10x18x128xf32, #tpu.memory_space<any>>
      %c0_i32_70 = arith.constant 0 : i32
      %c0_i32_71 = arith.constant 0 : i32
      %c0_i32_72 = arith.constant 0 : i32
      %111 = tpu.memref_slice %arg7[%c0_i32_66, %c0_i32_70, %c0_i32_71, %c0_i32_72] : memref<2x10x18x128xf32, #tpu.memory_space<vmem>> -> memref<1x10x18x128xf32, #tpu.memory_space<vmem>>
      %112 = tpu.memref_squeeze %111 : memref<1x10x18x128xf32, #tpu.memory_space<vmem>> -> memref<10x18x128xf32, #tpu.memory_space<vmem>>
      %113 = tpu.memref_slice %arg8[%c0_i32_67] : memref<2x!tpu.dma_semaphore, #tpu.memory_space<semaphore_mem>> -> memref<1x!tpu.dma_semaphore, #tpu.memory_space<semaphore_mem>>
      %114 = tpu.memref_squeeze %113 : memref<1x!tpu.dma_semaphore, #tpu.memory_space<semaphore_mem>> -> memref<!tpu.dma_semaphore, #tpu.memory_space<semaphore_mem>>
      tpu.enqueue_dma source(%110 : memref<10x18x128xf32, #tpu.memory_space<any>>) target(%112 : memref<10x18x128xf32, #tpu.memory_space<vmem>>) target_semaphore(%114 : memref<!tpu.dma_semaphore, #tpu.memory_space<semaphore_mem>>)
    } else {
    }
    %c1_i32_5 = arith.constant 1 : i32
    %13 = arith.addi %arg1, %c1_i32_5 : i32
    %c2_i32_6 = arith.constant 2 : i32
    %14 = arith.cmpi slt, %13, %c2_i32_6 : i32
    %15 = arith.extui %14 : i1 to i32
    %c0_i32_7 = arith.constant 0 : i32
    %16 = arith.cmpi ne, %15, %c0_i32_7 : i32
    scf.if %16 {
      %c1_i32_65 = arith.constant 1 : i32
      %108 = arith.addi %arg1, %c1_i32_65 : i32
      %c1_i32_66 = arith.constant 1 : i32
      %109 = arith.subi %c1_i32_66, %9 : i32
      %c8_i32 = arith.constant 8 : i32
      %110 = arith.muli %108, %c8_i32 : i32
      %111 = tpu.assume_multiple %110, 8 : i32
      %c0_i32_67 = arith.constant 0 : i32
      %c0_i32_68 = arith.constant 0 : i32
      %112 = tpu.memref_slice %arg2[%arg0, %111, %c0_i32_67, %c0_i32_68] : memref<2x18x18x128xf32, #tpu.memory_space<any>> -> memref<1x10x18x128xf32, #tpu.memory_space<any>>
      %113 = tpu.memref_squeeze %112 : memref<1x10x18x128xf32, #tpu.memory_space<any>> -> memref<10x18x128xf32, #tpu.memory_space<any>>
      %c0_i32_69 = arith.constant 0 : i32
      %c0_i32_70 = arith.constant 0 : i32
      %c0_i32_71 = arith.constant 0 : i32
      %114 = tpu.memref_slice %arg7[%109, %c0_i32_69, %c0_i32_70, %c0_i32_71] : memref<2x10x18x128xf32, #tpu.memory_space<vmem>> -> memref<1x10x18x128xf32, #tpu.memory_space<vmem>>
      %115 = tpu.memref_squeeze %114 : memref<1x10x18x128xf32, #tpu.memory_space<vmem>> -> memref<10x18x128xf32, #tpu.memory_space<vmem>>
      %116 = tpu.memref_slice %arg8[%109] : memref<2x!tpu.dma_semaphore, #tpu.memory_space<semaphore_mem>> -> memref<1x!tpu.dma_semaphore, #tpu.memory_space<semaphore_mem>>
      %117 = tpu.memref_squeeze %116 : memref<1x!tpu.dma_semaphore, #tpu.memory_space<semaphore_mem>> -> memref<!tpu.dma_semaphore, #tpu.memory_space<semaphore_mem>>
      tpu.enqueue_dma source(%113 : memref<10x18x128xf32, #tpu.memory_space<any>>) target(%115 : memref<10x18x128xf32, #tpu.memory_space<vmem>>) target_semaphore(%117 : memref<!tpu.dma_semaphore, #tpu.memory_space<semaphore_mem>>)
    } else {
    }
    %c0_i32_8 = arith.constant 0 : i32
    %c0_i32_9 = arith.constant 0 : i32
    %c0_i32_10 = arith.constant 0 : i32
    %17 = tpu.memref_slice %arg2[%arg0, %c0_i32_8, %c0_i32_9, %c0_i32_10] : memref<2x18x18x128xf32, #tpu.memory_space<any>> -> memref<1x10x18x128xf32, #tpu.memory_space<any>>
    %18 = tpu.memref_squeeze %17 : memref<1x10x18x128xf32, #tpu.memory_space<any>> -> memref<10x18x128xf32, #tpu.memory_space<any>>
    %c0_i32_11 = arith.constant 0 : i32
    %c0_i32_12 = arith.constant 0 : i32
    %c0_i32_13 = arith.constant 0 : i32
    %19 = tpu.memref_slice %arg7[%9, %c0_i32_11, %c0_i32_12, %c0_i32_13] : memref<2x10x18x128xf32, #tpu.memory_space<vmem>> -> memref<1x10x18x128xf32, #tpu.memory_space<vmem>>
    %20 = tpu.memref_squeeze %19 : memref<1x10x18x128xf32, #tpu.memory_space<vmem>> -> memref<10x18x128xf32, #tpu.memory_space<vmem>>
    %21 = tpu.memref_slice %arg8[%9] : memref<2x!tpu.dma_semaphore, #tpu.memory_space<semaphore_mem>> -> memref<1x!tpu.dma_semaphore, #tpu.memory_space<semaphore_mem>>
    %22 = tpu.memref_squeeze %21 : memref<1x!tpu.dma_semaphore, #tpu.memory_space<semaphore_mem>> -> memref<!tpu.dma_semaphore, #tpu.memory_space<semaphore_mem>>
    tpu.wait_dma2 semaphore(%22 : memref<!tpu.dma_semaphore, #tpu.memory_space<semaphore_mem>>) src(%18 : memref<10x18x128xf32, #tpu.memory_space<any>>) dst(%20 : memref<10x18x128xf32, #tpu.memory_space<vmem>>)
    %cst = arith.constant 0.000000e+00 : f32
    %23 = vector.broadcast %cst : f32 to vector<8x16x128xf32>
    %c0_i32_14 = arith.constant 0 : i32
    %c0_i32_15 = arith.constant 0 : i32
    %c0_i32_16 = arith.constant 0 : i32
    %24 = tpu.memref_slice %arg7[%9, %c0_i32_14, %c0_i32_15, %c0_i32_16] : memref<2x10x18x128xf32, #tpu.memory_space<vmem>> -> memref<1x10x18x128xf32, #tpu.memory_space<vmem>>
    %25 = tpu.memref_squeeze %24 : memref<1x10x18x128xf32, #tpu.memory_space<vmem>> -> memref<10x18x128xf32, #tpu.memory_space<vmem>>
    %c0 = arith.constant 0 : index
    %c0_17 = arith.constant 0 : index
    %c0_18 = arith.constant 0 : index
    %26 = vector.load %25[%c0, %c0_17, %c0_18] : memref<10x18x128xf32, #tpu.memory_space<vmem>>, vector<10x16x128xf32>
    %27 = vector.extract_strided_slice %26 {offsets = [0, 0, 0], sizes = [8, 16, 128], strides = [1, 1, 1]} : vector<10x16x128xf32> to vector<8x16x128xf32>
    %c0_19 = arith.constant 0 : index
    %c0_20 = arith.constant 0 : index
    %c0_21 = arith.constant 0 : index
    %28 = vector.load %arg3[%c0_19, %c0_20, %c0_21] : memref<3x3x128xf32, #tpu.memory_space<vmem>>, vector<1x1x128xf32>
    %29 = vector.shape_cast %28 : vector<1x1x128xf32> to vector<128xf32>
    %30 = vector.shape_cast %29 : vector<128xf32> to vector<1x1x128xf32>
    %31 = vector.broadcast %30 : vector<1x1x128xf32> to vector<8x16x128xf32>
    %32 = arith.mulf %27, %31 : vector<8x16x128xf32>
    %33 = arith.addf %23, %32 : vector<8x16x128xf32>
    %34 = vector.extract_strided_slice %26 {offsets = [1, 0, 0], sizes = [8, 16, 128], strides = [1, 1, 1]} : vector<10x16x128xf32> to vector<8x16x128xf32>
    %c1 = arith.constant 1 : index
    %c0_22 = arith.constant 0 : index
    %c0_23 = arith.constant 0 : index
    %35 = vector.load %arg3[%c1, %c0_22, %c0_23] : memref<3x3x128xf32, #tpu.memory_space<vmem>>, vector<1x1x128xf32>
    %36 = vector.shape_cast %35 : vector<1x1x128xf32> to vector<128xf32>
    %37 = vector.shape_cast %36 : vector<128xf32> to vector<1x1x128xf32>
    %38 = vector.broadcast %37 : vector<1x1x128xf32> to vector<8x16x128xf32>
    %39 = arith.mulf %34, %38 : vector<8x16x128xf32>
    %40 = arith.addf %33, %39 : vector<8x16x128xf32>
    %41 = vector.extract_strided_slice %26 {offsets = [2, 0, 0], sizes = [8, 16, 128], strides = [1, 1, 1]} : vector<10x16x128xf32> to vector<8x16x128xf32>
    %c2 = arith.constant 2 : index
    %c0_24 = arith.constant 0 : index
    %c0_25 = arith.constant 0 : index
    %42 = vector.load %arg3[%c2, %c0_24, %c0_25] : memref<3x3x128xf32, #tpu.memory_space<vmem>>, vector<1x1x128xf32>
    %43 = vector.shape_cast %42 : vector<1x1x128xf32> to vector<128xf32>
    %44 = vector.shape_cast %43 : vector<128xf32> to vector<1x1x128xf32>
    %45 = vector.broadcast %44 : vector<1x1x128xf32> to vector<8x16x128xf32>
    %46 = arith.mulf %41, %45 : vector<8x16x128xf32>
    %47 = arith.addf %40, %46 : vector<8x16x128xf32>
    %c0_i32_26 = arith.constant 0 : i32
    %c0_i32_27 = arith.constant 0 : i32
    %c0_i32_28 = arith.constant 0 : i32
    %48 = tpu.memref_slice %arg7[%9, %c0_i32_26, %c0_i32_27, %c0_i32_28] : memref<2x10x18x128xf32, #tpu.memory_space<vmem>> -> memref<1x10x18x128xf32, #tpu.memory_space<vmem>>
    %49 = tpu.memref_squeeze %48 : memref<1x10x18x128xf32, #tpu.memory_space<vmem>> -> memref<10x18x128xf32, #tpu.memory_space<vmem>>
    %c0_29 = arith.constant 0 : index
    %c1_30 = arith.constant 1 : index
    %c0_31 = arith.constant 0 : index
    %50 = vector.load %49[%c0_29, %c1_30, %c0_31] : memref<10x18x128xf32, #tpu.memory_space<vmem>>, vector<10x16x128xf32>
    %51 = vector.extract_strided_slice %50 {offsets = [0, 0, 0], sizes = [8, 16, 128], strides = [1, 1, 1]} : vector<10x16x128xf32> to vector<8x16x128xf32>
    %c0_32 = arith.constant 0 : index
    %c1_33 = arith.constant 1 : index
    %c0_34 = arith.constant 0 : index
    %52 = vector.load %arg3[%c0_32, %c1_33, %c0_34] : memref<3x3x128xf32, #tpu.memory_space<vmem>>, vector<1x1x128xf32>
    %53 = vector.shape_cast %52 : vector<1x1x128xf32> to vector<128xf32>
    %54 = vector.shape_cast %53 : vector<128xf32> to vector<1x1x128xf32>
    %55 = vector.broadcast %54 : vector<1x1x128xf32> to vector<8x16x128xf32>
    %56 = arith.mulf %51, %55 : vector<8x16x128xf32>
    %57 = arith.addf %47, %56 : vector<8x16x128xf32>
    %58 = vector.extract_strided_slice %50 {offsets = [1, 0, 0], sizes = [8, 16, 128], strides = [1, 1, 1]} : vector<10x16x128xf32> to vector<8x16x128xf32>
    %c1_35 = arith.constant 1 : index
    %c1_36 = arith.constant 1 : index
    %c0_37 = arith.constant 0 : index
    %59 = vector.load %arg3[%c1_35, %c1_36, %c0_37] : memref<3x3x128xf32, #tpu.memory_space<vmem>>, vector<1x1x128xf32>
    %60 = vector.shape_cast %59 : vector<1x1x128xf32> to vector<128xf32>
    %61 = vector.shape_cast %60 : vector<128xf32> to vector<1x1x128xf32>
    %62 = vector.broadcast %61 : vector<1x1x128xf32> to vector<8x16x128xf32>
    %63 = arith.mulf %58, %62 : vector<8x16x128xf32>
    %64 = arith.addf %57, %63 : vector<8x16x128xf32>
    %65 = vector.extract_strided_slice %50 {offsets = [2, 0, 0], sizes = [8, 16, 128], strides = [1, 1, 1]} : vector<10x16x128xf32> to vector<8x16x128xf32>
    %c2_38 = arith.constant 2 : index
    %c1_39 = arith.constant 1 : index
    %c0_40 = arith.constant 0 : index
    %66 = vector.load %arg3[%c2_38, %c1_39, %c0_40] : memref<3x3x128xf32, #tpu.memory_space<vmem>>, vector<1x1x128xf32>
    %67 = vector.shape_cast %66 : vector<1x1x128xf32> to vector<128xf32>
    %68 = vector.shape_cast %67 : vector<128xf32> to vector<1x1x128xf32>
    %69 = vector.broadcast %68 : vector<1x1x128xf32> to vector<8x16x128xf32>
    %70 = arith.mulf %65, %69 : vector<8x16x128xf32>
    %71 = arith.addf %64, %70 : vector<8x16x128xf32>
    %c0_i32_41 = arith.constant 0 : i32
    %c0_i32_42 = arith.constant 0 : i32
    %c0_i32_43 = arith.constant 0 : i32
    %72 = tpu.memref_slice %arg7[%9, %c0_i32_41, %c0_i32_42, %c0_i32_43] : memref<2x10x18x128xf32, #tpu.memory_space<vmem>> -> memref<1x10x18x128xf32, #tpu.memory_space<vmem>>
    %73 = tpu.memref_squeeze %72 : memref<1x10x18x128xf32, #tpu.memory_space<vmem>> -> memref<10x18x128xf32, #tpu.memory_space<vmem>>
    %c0_44 = arith.constant 0 : index
    %c2_45 = arith.constant 2 : index
    %c0_46 = arith.constant 0 : index
    %74 = vector.load %73[%c0_44, %c2_45, %c0_46] : memref<10x18x128xf32, #tpu.memory_space<vmem>>, vector<10x16x128xf32>
    %75 = vector.extract_strided_slice %74 {offsets = [0, 0, 0], sizes = [8, 16, 128], strides = [1, 1, 1]} : vector<10x16x128xf32> to vector<8x16x128xf32>
    %c0_47 = arith.constant 0 : index
    %c2_48 = arith.constant 2 : index
    %c0_49 = arith.constant 0 : index
    %76 = vector.load %arg3[%c0_47, %c2_48, %c0_49] : memref<3x3x128xf32, #tpu.memory_space<vmem>>, vector<1x1x128xf32>
    %77 = vector.shape_cast %76 : vector<1x1x128xf32> to vector<128xf32>
    %78 = vector.shape_cast %77 : vector<128xf32> to vector<1x1x128xf32>
    %79 = vector.broadcast %78 : vector<1x1x128xf32> to vector<8x16x128xf32>
    %80 = arith.mulf %75, %79 : vector<8x16x128xf32>
    %81 = arith.addf %71, %80 : vector<8x16x128xf32>
    %82 = vector.extract_strided_slice %74 {offsets = [1, 0, 0], sizes = [8, 16, 128], strides = [1, 1, 1]} : vector<10x16x128xf32> to vector<8x16x128xf32>
    %c1_50 = arith.constant 1 : index
    %c2_51 = arith.constant 2 : index
    %c0_52 = arith.constant 0 : index
    %83 = vector.load %arg3[%c1_50, %c2_51, %c0_52] : memref<3x3x128xf32, #tpu.memory_space<vmem>>, vector<1x1x128xf32>
    %84 = vector.shape_cast %83 : vector<1x1x128xf32> to vector<128xf32>
    %85 = vector.shape_cast %84 : vector<128xf32> to vector<1x1x128xf32>
    %86 = vector.broadcast %85 : vector<1x1x128xf32> to vector<8x16x128xf32>
    %87 = arith.mulf %82, %86 : vector<8x16x128xf32>
    %88 = arith.addf %81, %87 : vector<8x16x128xf32>
    %89 = vector.extract_strided_slice %74 {offsets = [2, 0, 0], sizes = [8, 16, 128], strides = [1, 1, 1]} : vector<10x16x128xf32> to vector<8x16x128xf32>
    %c2_53 = arith.constant 2 : index
    %c2_54 = arith.constant 2 : index
    %c0_55 = arith.constant 0 : index
    %90 = vector.load %arg3[%c2_53, %c2_54, %c0_55] : memref<3x3x128xf32, #tpu.memory_space<vmem>>, vector<1x1x128xf32>
    %91 = vector.shape_cast %90 : vector<1x1x128xf32> to vector<128xf32>
    %92 = vector.shape_cast %91 : vector<128xf32> to vector<1x1x128xf32>
    %93 = vector.broadcast %92 : vector<1x1x128xf32> to vector<8x16x128xf32>
    %94 = arith.mulf %89, %93 : vector<8x16x128xf32>
    %95 = arith.addf %88, %94 : vector<8x16x128xf32>
    %96 = vector.shape_cast %95 : vector<8x16x128xf32> to vector<128x128xf32>
    %c0_56 = arith.constant 0 : index
    %c0_57 = arith.constant 0 : index
    %97 = vector.load %arg4[%c0_56, %c0_57] : memref<128x128xf32, #tpu.memory_space<vmem>>, vector<128x128xf32>
    %cst_58 = arith.constant dense<0.000000e+00> : vector<128x128xf32>
    %98 = tpu.matmul %96, %97, %cst_58 {dimension_numbers = #tpu.dot_dimension_numbers<[1], [0], [0], [1], [0, 0, 1, 1], [], []>} : vector<128x128xf32>, vector<128x128xf32>, vector<128x128xf32> -> vector<128x128xf32>
    %c0_59 = arith.constant 0 : index
    %c0_60 = arith.constant 0 : index
    %99 = vector.load %arg5[%c0_59, %c0_60] : memref<1x128xf32, #tpu.memory_space<vmem>>, vector<1x128xf32>
    %100 = vector.shape_cast %99 : vector<1x128xf32> to vector<128xf32>
    %101 = vector.shape_cast %100 : vector<128xf32> to vector<1x128xf32>
    %102 = vector.broadcast %101 : vector<1x128xf32> to vector<128x128xf32>
    %103 = arith.addf %98, %102 : vector<128x128xf32>
    %104 = vector.shape_cast %103 : vector<128x128xf32> to vector<8x16x128xf32>
    %c0_61 = arith.constant 0 : index
    %c0_62 = arith.constant 0 : index
    %c0_63 = arith.constant 0 : index
    %c0_64 = arith.constant 0 : index
    %105 = vector.load %arg6[%c0_61, %c0_62, %c0_63, %c0_64] : memref<1x8x16x128xf32, #tpu.memory_space<vmem>>, vector<1x8x16x128xf32>
    %106 = vector.shape_cast %105 : vector<1x8x16x128xf32> to vector<8x16x128xf32>
    %107 = vector.shape_cast %104 : vector<8x16x128xf32> to vector<1x8x16x128xf32>
    tpu.vector_store %arg6[%c0_61, %c0_62, %c0_63, %c0_64], %107 {strides = array<i32>} : memref<1x8x16x128xf32, #tpu.memory_space<vmem>>, vector<1x8x16x128xf32>,
    return
  }
  func.func @transform_1(%arg0: i32, %arg1: i32) -> (i32, i32, i32) {
    %c0_i32 = arith.constant 0 : i32
    %c0_i32_0 = arith.constant 0 : i32
    %c0_i32_1 = arith.constant 0 : i32
    %c0_i32_2 = arith.constant 0 : i32
    return %c0_i32, %c0_i32_0, %c0_i32_1 : i32, i32, i32
  }
  func.func @transform_2(%arg0: i32, %arg1: i32) -> (i32, i32) {
    %c0_i32 = arith.constant 0 : i32
    %c0_i32_0 = arith.constant 0 : i32
    %c0_i32_1 = arith.constant 0 : i32
    return %c0_i32, %c0_i32_0 : i32, i32
  }
  func.func @transform_3(%arg0: i32, %arg1: i32) -> (i32, i32) {
    %c0_i32 = arith.constant 0 : i32
    %c0_i32_0 = arith.constant 0 : i32
    %c0_i32_1 = arith.constant 0 : i32
    return %c0_i32, %c0_i32_0 : i32, i32
  }
  func.func @transform_4(%arg0: i32, %arg1: i32) -> (i32, i32, i32, i32) {
    %c0_i32 = arith.constant 0 : i32
    %c0_i32_0 = arith.constant 0 : i32
    %c0_i32_1 = arith.constant 0 : i32
    return %arg0, %arg1, %c0_i32, %c0_i32_0 : i32, i32, i32, i32
  }
}

</mosaic_0001>

<bundles_post_ra>
// kernel: tpu_custom_call.1
= control target key start
LH: loop header
LB: loop body
LE: loop exit
PB: predicated region body
PF: predicated region fallthrough
CT: control target
= control target key end

     0   :  { %9 = vsyncpa [#allocation5], 0  ;;  %s2452_s0 = inlined_call_operand.vmem [shape: f32[2,18,18,128], index: 0, kind: input, shape index: {}]   ;;  %s2453_s1 = inlined_call_operand.vmem [shape: f32[3,3,128], index: 1, kind: input, shape index: {}]   ;;  %s2454_s2 = inlined_call_operand.vmem [shape: f32[128,128], index: 2, kind: input, shape index: {}]   ;;  %s2455_s3 = inlined_call_operand.vmem [shape: f32[1,128], index: 3, kind: input, shape index: {}]   ;;  %s2456_s4 = inlined_call_operand.hbm [shape: f32[2,16,16,128], index: 4, kind: output, shape index: {}]  }
   0x1   :  { %11 = vsyncpa [#allocation5 + $0x1], 0  ;;  %s1609_s15 = smov 0   ;;  %s1611_s16 = smov 0  }
   0x2   :  { %s1613_s17 = smov 0   ;;  %s1615_s18 = smov 0  }
   0x3   :  { %s1617_s19 = smov 0   ;;  %s1619_s20 = smov 0  }
   0x4   :  { %s1621_s21 = smov 0   ;;  %s1623_s22 = smov 0  }
   0x5 LB: > { %s1177_s23 = sadd.s32 4294967295, %s1579_s22   ;;  %s1178_s24 = sadd.s32 4294967294, %s1579_s22   ;;  %s1579_s22 = sphi %s1623_s22, %s17_s22   ;;  %s1575_s21 = sphi %s1621_s21, %s2486_s21   ;;  %s1571_s20 = sphi %s1619_s20, %s2485_s20   ;;  %s1567_s19 = sphi %s1617_s19, %s2484_s19   ;;  %s1563_s18 = sphi %s1615_s18, %s2483_s18   ;;  %s1559_s17 = sphi %s1613_s17, %s2482_s17   ;;  %s1555_s16 = sphi %s1611_s16, %s2481_s16   ;;  %s1551_s15 = sphi %s1609_s15, %s2480_s15  }
   0x6   : > { %s26_s25 = sadd.s32 1, %s1571_s20  ;;  %s29_s26 = sadd.s32 1, %s1575_s21 }
   0x7   : > { %p27_p0 = scmp.ge.s32.totalorder %s26_s25, 2  ;;  %p111_p1 = scmp.ne.s32.totalorder %s1559_s17, %s1555_s16 }
   0x8   : > { %p112_p2 = scmp.eq.s32.totalorder %s1177_s23, 3  ;;  %p117_p5 = scmp.ne.s32.totalorder %s1555_s16, %s1551_s15 }
   0x9   : > { %s2488_s25 = smov (%p27_p0, %s26_s25), 0  ;;  %s2490_s26 = smov (!%p27_p0, %s29_s26), %s1575_s21 }
   0xa   : > { %s97_s27 = ssub.s32 %s1571_s20, %s2488_s25  ;;  %p1660_p3 = por %p112_p2, %p111_p1 }
   0xb   : > { %p31_p4 = scmp.ge.s32.totalorder %s2490_s26, 2  ;;  %p118_p6 = scmp.eq.s32.totalorder %s1178_s24, 3 }
   0xc   : > { %p1180_p7 = scmp.ge.s32.totalorder %s1579_s22, 1  ;;  %p145_p9 = scmp.lt.s32.totalorder %s1579_s22, 5 }
   0xd   : > { %s2492_s26 = smov (%p31_p4, %s2490_s26), 0  ;;  %p1669_p8 = por %p118_p6, %p117_p5 }
   0xe   : > { %s96_s30 = ssub.s32 %s1575_s21, %s2492_s26  ;;  %s101_s5 = sadd.s32 1, %s1559_s17 }
   0xf   : > { %s98_s6 = sor.u32 %s97_s27, %s96_s30  ;;  %p146_p10 = pnand %p1180_p7, %p145_p9 }
  0x10   : > { %p99_p11 = scmp.eq.s32.totalorder %s98_s6, 0 }
  0x11   : > { %149 = sbr.rel (%p146_p10) target bundleno = 398 (0x18e), region = 32 }
  0x12   : > { %s1678_s7 = scalar_select %p99_p11, %s1559_s17, %s101_s5  }
  0x18   : > { %s2457_s8 = sand.u32 1, %s1555_s16   ;;  %p165_p12 = scmp.lt.s32.totalorder %s1563_s18, 0 }
  0x19   : > { %s1181_s9 = sshll.u32 %s2457_s8, 7  ;;  %s166_s10 = ssub.s32 0, %s1563_s18 }
  0x1a   : > { %s1182_s11 = smin.u32 %s1563_s18, %s166_s10  ;;  %s1688_s23 = scalar_lea.vmem [#allocation4], %s1181_s9 }
  0x1b   : > { %s168_s12 = sand.u32 1, %s1182_s11   ;;  %p1185_p0 = scmp.ne.s32.totalorder %s1563_s18, 0 }
  0x1c   : > { %s169_s13 = ssub.s32 0, %s168_s12  ;;  %s182_s24 = smul.u32 (!%p1185_p0), 432, %s1567_s19 }
  0x1d   : > { %s2494_s13 = smov (!%p165_p12, %s169_s13), %s168_s12  ;;  %180 = sbr.rel (%p1185_p0) target bundleno = 50 (0x32), region = 36 }
  0x1e   : > { %p1184_p13 = scmp.lt.s32.totalorder %s2494_s13, 0  ;;  %s175_s14 = sadd.s32 2, %s2494_s13 }
  0x1f   : > { %s1695_s5 = scalar_lea.vmem (!%p1185_p0), %s2452_s0, %s182_s24 }
  0x20   : > { %s2496_s14 = smov (!%p1184_p13, %s175_s14), %s2494_s13  ;;  %v240_v0 = vld [vmem:[%s1695_s5] sm:$0xff] (!%p1185_p0)  ;;  %v242_v1 = vld [vmem:[%s1695_s5 + $0x8] sm:$0xff] (!%p1185_p0)  ;;  %v244_v2 = vld [vmem:[%s1695_s5 + $0x18] sm:$0xff] (!%p1185_p0) }
  0x21   : > { %241 = vst [vmem:[#allocation2] sm:$0xff] (!%p1185_p0), %v240_v0  ;;  %243 = vst [vmem:[#allocation2 + $0x8] sm:$0xff] (!%p1185_p0), %v242_v1  ;;  %v246_v3 = vld [vmem:[%s1695_s5 + $0x20] sm:$0xff] (!%p1185_p0)  ;;  %v248_v4 = vld [vmem:[%s1695_s5 + $0x30] sm:$0xff] (!%p1185_p0) }
  0x22   : > { %245 = vst [vmem:[#allocation2 + $0x18] sm:$0xff] (!%p1185_p0), %v244_v2  ;;  %v250_v5 = vld [vmem:[%s1695_s5 + $0x38] sm:$0xff] (!%p1185_p0)  ;;  %247 = vst [vmem:[#allocation2 + $0x20] sm:$0xff] (!%p1185_p0), %v246_v3  ;;  %v252_v6 = vld [vmem:[%s1695_s5 + $0x48] sm:$0xff] (!%p1185_p0) }
  0x23   : > { %249 = vst [vmem:[#allocation2 + $0x30] sm:$0xff] (!%p1185_p0), %v248_v4  ;;  %251 = vst [vmem:[#allocation2 + $0x38] sm:$0xff] (!%p1185_p0), %v250_v5  ;;  %v254_v7 = vld [vmem:[%s1695_s5 + $0x50] sm:$0xff] (!%p1185_p0)  ;;  %v256_v8 = vld [vmem:[%s1695_s5 + $0x60] sm:$0xff] (!%p1185_p0) }
  0x24   : > { %253 = vst [vmem:[#allocation2 + $0x48] sm:$0xff] %v252_v6  ;;  %255 = vst [vmem:[#allocation2 + $0x50] sm:$0xff] %v254_v7  ;;  %v258_v9 = vld [vmem:[%s1695_s5 + $0x68] sm:$0xff]  ;;  %v260_v10 = vld [vmem:[%s1695_s5 + $0x78] sm:$0xff] }
  0x25   : > { %257 = vst [vmem:[#allocation2 + $0x60] sm:$0xff] %v256_v8  ;;  %v262_v11 = vld [vmem:[%s1695_s5 + $0x80] sm:$0xff]  ;;  %259 = vst [vmem:[#allocation2 + $0x68] sm:$0xff] %v258_v9  ;;  %v264_v12 = vld [vmem:[%s1695_s5 + $0x90] sm:$0xff] }
  0x26   : > { %261 = vst [vmem:[#allocation2 + $0x78] sm:$0xff] %v260_v10  ;;  %263 = vst [vmem:[#allocation2 + $0x80] sm:$0xff] %v262_v11  ;;  %v266_v13 = vld [vmem:[%s1695_s5 + $0x98] sm:$0xff]  ;;  %v268_v14 = vld [vmem:[%s1695_s5 + $0xa8] sm:$0xff] }
  0x27   : > { %265 = vst [vmem:[#allocation2 + $0x90] sm:$0xff] %v264_v12  ;;  %267 = vst [vmem:[#allocation2 + $0x98] sm:$0xff] %v266_v13  ;;  %v270_v15 = vld [vmem:[%s1695_s5 + $0xb0] sm:$0xff]  ;;  %v272_v16 = vld [vmem:[%s1695_s5 + $0xc0] sm:$0xff] }
  0x28   : > { %269 = vst [vmem:[#allocation2 + $0xa8] sm:$0xff] %v268_v14  ;;  %v274_v17 = vld [vmem:[%s1695_s5 + $0xc8] sm:$0xff]  ;;  %271 = vst [vmem:[#allocation2 + $0xb0] sm:$0xff] %v270_v15  ;;  %v276_v18 = vld [vmem:[%s1695_s5 + $0xd8] sm:$0xff] }
  0x29   : > { %273 = vst [vmem:[#allocation2 + $0xc0] sm:$0xff] %v272_v16  ;;  %275 = vst [vmem:[#allocation2 + $0xc8] sm:$0xff] %v274_v17  ;;  %v278_v19 = vld [vmem:[%s1695_s5 + $0xe0] sm:$0xff]  ;;  %v1186_v20 = vld [vmem:[%s1695_s5 + $0x10] sm:$0x3] }
  0x2a   : > { %277 = vst [vmem:[#allocation2 + $0xd8] sm:$0xff] %v276_v18  ;;  %279 = vst [vmem:[#allocation2 + $0xe0] sm:$0xff] %v278_v19  ;;  %v1187_v21 = vld [vmem:[%s1695_s5 + $0x28] sm:$0x3]  ;;  %v1188_v22 = vld [vmem:[%s1695_s5 + $0x40] sm:$0x3] }
  0x2b   : > { %290 = vst [vmem:[#allocation2 + $0x10] sm:$0x3] %v1186_v20  ;;  %v1189_v23 = vld [vmem:[%s1695_s5 + $0x58] sm:$0x3]  ;;  %292 = vst [vmem:[#allocation2 + $0x28] sm:$0x3] %v1187_v21 }
  0x2c   : > { %294 = vst [vmem:[#allocation2 + $0x40] sm:$0x3] %v1188_v22  ;;  %296 = vst [vmem:[#allocation2 + $0x58] sm:$0x3] %v1189_v23  ;;  %v1190_v24 = vld [vmem:[%s1695_s5 + $0x70] sm:$0x3] }
  0x2d   : > { %v1191_v25 = vld [vmem:[%s1695_s5 + $0x88] sm:$0x3]  ;;  %v1192_v26 = vld [vmem:[%s1695_s5 + $0xa0] sm:$0x3]  ;;  %298 = vst [vmem:[#allocation2 + $0x70] sm:$0x3] %v1190_v24 }
  0x2e   : > { %300 = vst [vmem:[#allocation2 + $0x88] sm:$0x3] %v1191_v25  ;;  %302 = vst [vmem:[#allocation2 + $0xa0] sm:$0x3] %v1192_v26  ;;  %v1193_v27 = vld [vmem:[%s1695_s5 + $0xb8] sm:$0x3] }
  0x2f   : > { %v1194_v28 = vld [vmem:[%s1695_s5 + $0xd0] sm:$0x3]  ;;  %v1195_v29 = vld [vmem:[%s1695_s5 + $0xe8] sm:$0x3]  ;;  %304 = vst [vmem:[#allocation2 + $0xb8] sm:$0x3] %v1193_v27 }
  0x30   : > { %306 = vst [vmem:[#allocation2 + $0xd0] sm:$0x3] %v1194_v28  ;;  %308 = vst [vmem:[#allocation2 + $0xe8] sm:$0x3] %v1195_v29 }
  0x31   : > { %312 = vsyncadd [#allocation3], 2880 }
  0x32 PF: > { %s313_s6 = sadd.s32 1, %s1563_s18 }
  0x33   : > { %p1196_p1 = scmp.ge.s32.totalorder %s313_s6, 2 }
  0x34   : > { %s318_s9 = ssub.s32 (!%p1196_p1), 1, %s2496_s14  ;;  %s1102_s10 = smul.u32 (!%p1196_p1), 192, %s1563_s18 }
  0x35   : > { %317 = sbr.rel (%p1196_p1) target bundleno = 76 (0x4c), region = 77  ;;  %s326_s6 = scalar_lea.sflag (!%p1196_p1), [#allocation3], %s318_s9 }
  0x36   : > { %s1103_s11 = smul.u32 (!%p1196_p1), 432, %s1567_s19 }
  0x37   : > { %s324_s12 = smul.u32 (!%p1196_p1), 240, %s318_s9 }
  0x38   : > { %s1104_s13 = sadd.s32 (!%p1196_p1), %s1103_s11, %s1102_s10 }
  0x39   : > { %s1736_s30 = scalar_lea.vmem (!%p1196_p1), %s2452_s0, %s1104_s13  ;;  %s1741_s5 = scalar_lea.vmem (!%p1196_p1), [#allocation2], %s324_s12 }
  0x3a   : > { %v1198_v30 = vld [vmem:[%s1736_s30 + $0xc0] sm:$0xff] (!%p1196_p1)  ;;  %v1199_v31 = vld [vmem:[%s1736_s30 + $0xc8] sm:$0xff] (!%p1196_p1)  ;;  %v1200_v32 = vld [vmem:[%s1736_s30 + $0xd8] sm:$0xff] (!%p1196_p1) }
  0x3b   : > { %383 = vst [vmem:[%s1741_s5] sm:$0xff] (!%p1196_p1), %v1198_v30  ;;  %385 = vst [vmem:[%s1741_s5 + $0x8] sm:$0xff] (!%p1196_p1), %v1199_v31  ;;  %v1201_v33 = vld [vmem:[%s1736_s30 + $0xe0] sm:$0xff] (!%p1196_p1)  ;;  %v1202_v34 = vld [vmem:[%s1736_s30 + $0xf0] sm:$0xff] (!%p1196_p1) }
  0x3c   : > { %387 = vst [vmem:[%s1741_s5 + $0x18] sm:$0xff] %v1200_v32  ;;  %v1203_v35 = vld [vmem:[%s1736_s30 + $0xf8] sm:$0xff]  ;;  %389 = vst [vmem:[%s1741_s5 + $0x20] sm:$0xff] %v1201_v33  ;;  %v1204_v36 = vld [vmem:[%s1736_s30 + $0x108] sm:$0xff] }
  0x3d   : > { %391 = vst [vmem:[%s1741_s5 + $0x30] sm:$0xff] %v1202_v34  ;;  %393 = vst [vmem:[%s1741_s5 + $0x38] sm:$0xff] %v1203_v35  ;;  %v1205_v37 = vld [vmem:[%s1736_s30 + $0x110] sm:$0xff]  ;;  %v1206_v38 = vld [vmem:[%s1736_s30 + $0x120] sm:$0xff] }
  0x3e   : > { %395 = vst [vmem:[%s1741_s5 + $0x48] sm:$0xff] %v1204_v36  ;;  %397 = vst [vmem:[%s1741_s5 + $0x50] sm:$0xff] %v1205_v37  ;;  %v1207_v39 = vld [vmem:[%s1736_s30 + $0x128] sm:$0xff]  ;;  %v1208_v40 = vld [vmem:[%s1736_s30 + $0x138] sm:$0xff] }
  0x3f   : > { %399 = vst [vmem:[%s1741_s5 + $0x60] sm:$0xff] %v1206_v38  ;;  %v1209_v41 = vld [vmem:[%s1736_s30 + $0x140] sm:$0xff]  ;;  %401 = vst [vmem:[%s1741_s5 + $0x68] sm:$0xff] %v1207_v39  ;;  %v1210_v42 = vld [vmem:[%s1736_s30 + $0x150] sm:$0xff] }
  0x40   : > { %403 = vst [vmem:[%s1741_s5 + $0x78] sm:$0xff] %v1208_v40  ;;  %405 = vst [vmem:[%s1741_s5 + $0x80] sm:$0xff] %v1209_v41  ;;  %v1211_v43 = vld [vmem:[%s1736_s30 + $0x158] sm:$0xff]  ;;  %v1212_v44 = vld [vmem:[%s1736_s30 + $0x168] sm:$0xff] }
  0x41   : > { %407 = vst [vmem:[%s1741_s5 + $0x90] sm:$0xff] %v1210_v42  ;;  %409 = vst [vmem:[%s1741_s5 + $0x98] sm:$0xff] %v1211_v43  ;;  %v1213_v45 = vld [vmem:[%s1736_s30 + $0x170] sm:$0xff]  ;;  %v1214_v46 = vld [vmem:[%s1736_s30 + $0x180] sm:$0xff] }
  0x42   : > { %411 = vst [vmem:[%s1741_s5 + $0xa8] sm:$0xff] %v1212_v44  ;;  %v1215_v47 = vld [vmem:[%s1736_s30 + $0x188] sm:$0xff]  ;;  %413 = vst [vmem:[%s1741_s5 + $0xb0] sm:$0xff] %v1213_v45  ;;  %v1216_v48 = vld [vmem:[%s1736_s30 + $0x198] sm:$0xff] }
  0x43   : > { %415 = vst [vmem:[%s1741_s5 + $0xc0] sm:$0xff] %v1214_v46  ;;  %417 = vst [vmem:[%s1741_s5 + $0xc8] sm:$0xff] %v1215_v47  ;;  %v1217_v49 = vld [vmem:[%s1736_s30 + $0x1a0] sm:$0xff]  ;;  %v1218_v50 = vld [vmem:[%s1736_s30 + $0xd0] sm:$0x3] }
  0x44   : > { %419 = vst [vmem:[%s1741_s5 + $0xd8] sm:$0xff] %v1216_v48  ;;  %421 = vst [vmem:[%s1741_s5 + $0xe0] sm:$0xff] %v1217_v49  ;;  %v1220_v51 = vld [vmem:[%s1736_s30 + $0xe8] sm:$0x3]  ;;  %v1222_v52 = vld [vmem:[%s1736_s30 + $0x100] sm:$0x3] }
  0x45   : > { %1219 = vst [vmem:[%s1741_s5 + $0x10] sm:$0x3] %v1218_v50  ;;  %v1224_v53 = vld [vmem:[%s1736_s30 + $0x118] sm:$0x3]  ;;  %1221 = vst [vmem:[%s1741_s5 + $0x28] sm:$0x3] %v1220_v51 }
  0x46   : > { %1223 = vst [vmem:[%s1741_s5 + $0x40] sm:$0x3] %v1222_v52  ;;  %1225 = vst [vmem:[%s1741_s5 + $0x58] sm:$0x3] %v1224_v53  ;;  %v1226_v54 = vld [vmem:[%s1736_s30 + $0x130] sm:$0x3] }
  0x47   : > { %v1228_v55 = vld [vmem:[%s1736_s30 + $0x148] sm:$0x3]  ;;  %v1230_v56 = vld [vmem:[%s1736_s30 + $0x160] sm:$0x3]  ;;  %1227 = vst [vmem:[%s1741_s5 + $0x70] sm:$0x3] %v1226_v54 }
  0x48   : > { %1229 = vst [vmem:[%s1741_s5 + $0x88] sm:$0x3] %v1228_v55  ;;  %1231 = vst [vmem:[%s1741_s5 + $0xa0] sm:$0x3] %v1230_v56  ;;  %v1232_v57 = vld [vmem:[%s1736_s30 + $0x178] sm:$0x3] }
  0x49   : > { %v1234_v58 = vld [vmem:[%s1736_s30 + $0x190] sm:$0x3]  ;;  %v1236_v59 = vld [vmem:[%s1736_s30 + $0x1a8] sm:$0x3]  ;;  %1233 = vst [vmem:[%s1741_s5 + $0xb8] sm:$0x3] %v1232_v57 }
  0x4a   : > { %1235 = vst [vmem:[%s1741_s5 + $0xd0] sm:$0x3] %v1234_v58  ;;  %1237 = vst [vmem:[%s1741_s5 + $0xe8] sm:$0x3] %v1236_v59 }
  0x4b   : > { %454 = vsyncadd %s326_s6, 2880 }
  0x4c PF: > { %s455_s10 = smul.u32 240, %s2496_s14  ;;  %s457_s12 = scalar_lea.sflag [#allocation3], %s2496_s14 }
  0x4e   : > { %s1803_s11 = scalar_lea.vmem [#allocation2], %s455_s10 }
  0x4f   : > { %1543 = dma.done.wait %s457_s12, 2880 }
  0x50   : > { %1544 = vsyncadd %s457_s12, 4294964416  ;;  %v857_v60 = vld [vmem:[%s2454_s2] sm:$0xff]  ;;  %v858_v61 = vld [vmem:[%s2454_s2 + $0x8] sm:$0xff]  ;;  %s1273_s6 = sshll.u32 %s1563_s18, 4  ;;  %s1267_s14 = sshll.u32 %s1567_s19, 5 }
  0x51   : > { %v859_v62 = vld [vmem:[%s2454_s2 + $0x10] sm:$0xff]  ;;  %v1362_v63 = vpack.c.bf16 %v858_v61, %v857_v60  ;;  %v860_v0 = vld [vmem:[%s2454_s2 + $0x18] sm:$0xff]  ;;  %v861_v2 = vld [vmem:[%s2454_s2 + $0x20] sm:$0xff]  ;;  %s1055_s10 = sadd.s32 %s1273_s6, %s1267_s14  ;;  %s1058_s13 = sshll.u32 %s1688_s23, 4  ;;  %s2394_s13 = int_to_ptr.vmem [resolvable:$true] %s1058_s13 }
  0x52   : > { %v1366_v1 = vpack.c.bf16 %v860_v0, %v859_v62  ;;  %v862_v3 = vld [vmem:[%s2454_s2 + $0x28] sm:$0xff]  ;;  %v863_v4 = vld [vmem:[%s2454_s2 + $0x30] sm:$0xff]  ;;  %v864_v5 = vld [vmem:[%s2454_s2 + $0x38] sm:$0xff]  ;;  %s1268_s12 = sshll.u32 %s1055_s10, 7  ;;  %s2479_s19 = sand.u32 1, %s1555_s16  }
  0x53   : > { %1363 = vmatprep.subr.bf16.mxu0 %v1362_v63  ;;  %1394 = vmatprep.subr.bf16.mxu1 %v1362_v63  ;;  %v865_v6 = vld [vmem:[%s2454_s2 + $0x40] sm:$0xff]  ;;  %v866_v7 = vld [vmem:[%s2454_s2 + $0x48] sm:$0xff]  ;;  %v867_v8 = vld [vmem:[%s2454_s2 + $0x50] sm:$0xff]  ;;  %v1370_v10 = vpack.c.bf16 %v862_v3, %v861_v2  ;;  %v1374_v24 = vpack.c.bf16 %v864_v5, %v863_v4  ;;  %s2392_s18 = scalar_lea.hbm %s2456_s4, %s1268_s12  ;;  %s2400_s30 = scalar_lea.sflag [#allocation5], %s2479_s19 }
  0x54   : > { %1365 = vmatpush3.bf16.msra.mxu0 %v1362_v63  ;;  %1402 = vmatpush3.bf16.msra.mxu1 %v1362_v63  ;;  %v868_v9 = vld [vmem:[%s2454_s2 + $0x58] sm:$0xff]  ;;  %v869_v11 = vld [vmem:[%s2454_s2 + $0x60] sm:$0xff]  ;;  %v870_v12 = vld [vmem:[%s2454_s2 + $0x68] sm:$0xff]  ;;  %v1875_v25 = vpack.c.bf16 %v866_v7, %v865_v6  ;;  %s1483_s8 = scalar_lea.vmem %s2394_s13, 2048  ;;  %s1581_s5 = smov [#allocation4]  }
  0x55   : > { %1367 = vmatprep.subr.bf16.mxu0 %v1366_v1  ;;  %1395 = vmatprep.subr.bf16.mxu1 %v1366_v1  ;;  %v871_v13 = vld [vmem:[%s2454_s2 + $0x70] sm:$0xff]  ;;  %v464_v15 = vld [vmem:[%s1803_s11 + $0x18] sm:$0xff]  ;;  %v1857_v17 = vld [vmem:[%s2453_s1] ss:$0 sm:$0xff]  ;;  %v1889_v30 = vpack.c.bf16 %v868_v9, %v867_v8  ;;  %v1898_v35 = vpack.c.bf16 %v870_v12, %v869_v11  ;;  %p1484_p2 = scmp.ne.s32.totalorder %s2394_s13, %s1483_s8  ;;  %s1487_s9 = sshll.u32 %s1581_s5, 4  ;;  %s1488_s9 = int_to_ptr.vmem [resolvable:$false] %s1487_s9 }
  0x56   : > { %v462_v14 = vld [vmem:[%s1803_s11] sm:$0xff]  ;;  %v466_v16 = vld [vmem:[%s1803_s11 + $0x30] sm:$0xff]  ;;  %v872_v19 = vld [vmem:[%s2454_s2 + $0x78] sm:$0xff]  ;;  %v1903_v37 = vmul.f32 %v1857_v17, %v464_v15  ;;  %p1490_p6 = scmp.lt.s32.totalorder %s2394_s13, %s1488_s9 }
  0x57   : > { %v1862_v18 = vld [vmem:[%s2453_s1 + $0x4] ss:$0 sm:$0xff]  ;;  %v487_v20 = vmul.f32 %v1857_v17, %v462_v14  ;;  %v1872_v22 = vld [vmem:[%s2453_s1 + $0x8] ss:$0 sm:$0xff]  ;;  %v597_v27 = vld [vmem:[%s1803_s11 + $0x19] sm:$0xff]  ;;  %v1900_v36 = vpack.c.bf16 %v872_v19, %v871_v13  ;;  %v1906_v38 = vmul.f32 %v1857_v17, %v466_v16  ;;  %p1485_p4 = pnand %p1484_p2, %p1660_p3 }
  0x58   : > { %v525_v21 = vmul.f32 %v1862_v18, %v464_v15  ;;  %v595_v23 = vld [vmem:[%s1803_s11 + $0x1] sm:$0xff]  ;;  %1369 = vmatpush3.bf16.msra.mxu0 %v1366_v1  ;;  %1403 = vmatpush3.bf16.msra.mxu1 %v1366_v1  ;;  %v563_v26 = vmul.f32 %v1872_v22, %v466_v16  ;;  %v599_v32 = vld [vmem:[%s1803_s11 + $0x31] sm:$0xff]  ;;  %v1896_v34 = vld [vmem:[%s2453_s1 + $0x9] ss:$0 sm:$0xff]  ;;  %v1916_v42 = vmul.f32 %v1862_v18, %v466_v16 }
  0x59   : > { %v1882_v28 = vld [vmem:[%s2453_s1 + $0x1] ss:$0 sm:$0xff]  ;;  %v1887_v29 = vld [vmem:[%s2453_s1 + $0x5] ss:$0 sm:$0xff]  ;;  %1371 = vmatprep.subr.bf16.mxu0 %v1370_v10  ;;  %1396 = vmatprep.subr.bf16.mxu1 %v1370_v10  ;;  %v1913_v41 = vld [vmem:[%s2453_s1 + $0x2] ss:$0 sm:$0xff]  ;;  %v694_v51 = vmul.f32 %v1896_v34, %v599_v32  ;;  %p1486_p5 = pneg %p1485_p4 }
  0x5a   : > { %v541_v31 = vadd.f32 %v525_v21, %v487_v20  ;;  %v620_v33 = vmul.f32 %v1882_v28, %v595_v23  ;;  %v726_v39 = vld [vmem:[%s1803_s11 + $0x2] sm:$0xff]  ;;  %v728_v40 = vld [vmem:[%s1803_s11 + $0x1a] sm:$0xff]  ;;  %v1919_v44 = vmul.f32 %v1882_v28, %v597_v27  ;;  %v657_v45 = vmul.f32 %v1887_v29, %v597_v27  ;;  %v730_v46 = vld [vmem:[%s1803_s11 + $0x32] sm:$0xff] }
  0x5b   : > { %v1924_v47 = vld [vmem:[%s1803_s11 + $0x60] sm:$0xff]  ;;  %v1927_v48 = vld [vmem:[%s1803_s11 + $0x78] sm:$0xff]  ;;  %v1930_v49 = vmul.f32 %v1882_v28, %v599_v32  ;;  %v1933_v50 = vmul.f32 %v1887_v29, %v599_v32  ;;  %v474_v54 = vld [vmem:[%s1803_s11 + $0x90] sm:$0xff]  ;;  %v751_v56 = vmul.f32 %v1913_v41, %v726_v39  ;;  %v1954_v59 = vmul.f32 %v1913_v41, %v728_v40 }
  0x5c   : > { %v579_v43 = vadd.f32 %v563_v26, %v541_v31  ;;  %2467 = vst [vmem:[#allocation10_spill] sm:$0xff] %v1927_v48  ;;  %1373 = vmatpush3.bf16.msra.mxu0 %v1370_v10  ;;  %1404 = vmatpush3.bf16.msra.mxu1 %v1370_v10  ;;  %v1939_v52 = vld [vmem:[%s2453_s1 + $0x6] ss:$0 sm:$0xff]  ;;  %v1944_v53 = vld [vmem:[%s2453_s1 + $0xa] ss:$0 sm:$0xff]  ;;  %v495_v57 = vmul.f32 %v1857_v17, %v1924_v47 }
  0x5d   : > { %1375 = vmatprep.subr.bf16.mxu0 %v1374_v24  ;;  %1397 = vmatprep.subr.bf16.mxu1 %v1374_v24  ;;  %v1951_v58 = vld [vmem:[%s1803_s11 + $0x61] sm:$0xff]  ;;  %v1957_v60 = vmul.f32 %v1913_v41, %v730_v46  ;;  %v533_v61 = vmul.f32 %v1862_v18, %v1927_v48  ;;  %v571_v62 = vmul.f32 %v1872_v22, %v474_v54  ;;  %v1968_v3 = vld [vmem:[%s1803_s11 + $0x79] sm:$0xff]  ;;  %v607_v6 = vld [vmem:[%s1803_s11 + $0x91] sm:$0xff] }
  0x5e   : > { %v636_v55 = vadd.f32 %v620_v33, %v579_v43  ;;  %v788_v0 = vmul.f32 %v1939_v52, %v728_v40  ;;  %v1964_v1 = vmul.f32 %v1939_v52, %v730_v46  ;;  %v825_v2 = vmul.f32 %v1944_v53, %v730_v46  ;;  %2469 = vst [vmem:[#allocation12_spill] sm:$0xff] %v1968_v3  ;;  %v463_v8 = vld [vmem:[%s1803_s11 + $0x8] sm:$0xff]  ;;  %v1978_v9 = vld [vmem:[%s1803_s11 + $0x20] sm:$0xff]  ;;  %v1993_v14 = vld [vmem:[%s1803_s11 + $0x38] sm:$0xff] }
  0x5f   : > { %2468 = vst [vmem:[#allocation11_spill] sm:$0xff] %v1957_v60  ;;  %v1971_v4 = vmul.f32 %v1857_v17, %v474_v54  ;;  %v549_v5 = vadd.f32 %v533_v61, %v495_v57  ;;  %v628_v7 = vmul.f32 %v1882_v28, %v1951_v58  ;;  %v1983_v11 = vmul.f32 %v1862_v18, %v474_v54  ;;  %v1990_v13 = vld [vmem:[%s1803_s11 + $0x62] sm:$0xff]  ;;  %v2006_v26 = vld [vmem:[%s1803_s11 + $0x7a] sm:$0xff] }
  0x60   : > { %v673_v63 = vadd.f32 %v657_v45, %v636_v55  ;;  %1377 = vmatpush3.bf16.msra.mxu0 %v1374_v24  ;;  %1405 = vmatpush3.bf16.msra.mxu1 %v1374_v24  ;;  %v1987_v12 = vmul.f32 %v1882_v28, %v1968_v3  ;;  %v1996_v16 = vmul.f32 %v1882_v28, %v607_v6  ;;  %v596_v21 = vld [vmem:[%s1803_s11 + $0x9] sm:$0xff]  ;;  %v2018_v40 = vld [vmem:[%s1803_s11 + $0x21] sm:$0xff]  ;;  %v2033_v55 = vld [vmem:[%s1803_s11 + $0x98] sm:$0xff] }
  0x61   : > { %1379 = vmatprep.subr.bf16.mxu0 %v1875_v25  ;;  %1398 = vmatprep.subr.bf16.mxu1 %v1875_v25  ;;  %v587_v15 = vadd.f32 %v571_v62, %v549_v5  ;;  %v665_v19 = vmul.f32 %v1887_v29, %v1968_v3  ;;  %v2001_v20 = vmul.f32 %v1887_v29, %v607_v6  ;;  %v2021_v43 = vld [vmem:[%s1803_s11 + $0x68] sm:$0xff]  ;;  %v2030_v54 = vld [vmem:[%s1803_s11 + $0x80] sm:$0xff]  ;;  %v2114_v3 = vld [vmem:[%s1803_s11 + $0x50] sm:$0xff] }
  0x62   : > { %v710_v10 = vadd.f32 %v694_v51, %v673_v63  ;;  %v702_v24 = vmul.f32 %v1896_v34, %v607_v6  ;;  %2470 = vst [vmem:[#allocation13_spill] sm:$0xff] %v2006_v26  ;;  %v488_v27 = vmul.f32 %v1857_v17, %v463_v8  ;;  %v526_v31 = vmul.f32 %v1862_v18, %v1978_v9  ;;  %v2046_v63 = vld [vmem:[%s1803_s11 + $0x39] sm:$0xff]  ;;  %v2117_v60 = vld [vmem:[%s1803_s11 + $0x82] sm:$0xff] }
  0x63   : > { %v644_v32 = vadd.f32 %v628_v7, %v587_v15  ;;  %v759_v33 = vmul.f32 %v1913_v41, %v1990_v13  ;;  %v564_v39 = vmul.f32 %v1872_v22, %v1993_v14  ;;  %v621_v51 = vmul.f32 %v1882_v28, %v596_v21  ;;  %v727_v7 = vld [vmem:[%s1803_s11 + $0xa] sm:$0xff] }
  0x64   : > { %v767_v23 = vadd.f32 %v751_v56, %v710_v10  ;;  %1381 = vmatpush3.bf16.msra.mxu0 %v1875_v25  ;;  %1406 = vmatpush3.bf16.msra.mxu1 %v1875_v25  ;;  %v2026_v25 = vld [vmem:[%s1803_s11 + $0x92] sm:$0xff]  ;;  %v542_v46 = vadd.f32 %v526_v31, %v488_v27  ;;  %v2037_v57 = vmul.f32 %v1913_v41, %v2006_v26  ;;  %v2054_v10 = vld [vmem:[%s1803_s11 + $0x69] sm:$0xff] }
  0x65   : > { %1383 = vmatprep.subr.bf16.mxu0 %v1889_v30  ;;  %1399 = vmatprep.subr.bf16.mxu1 %v1889_v30  ;;  %v681_v56 = vadd.f32 %v665_v19, %v644_v32  ;;  %v796_v61 = vmul.f32 %v1939_v52, %v2006_v26  ;;  %v2043_v62 = vmul.f32 %v1939_v52, %v2026_v25  ;;  %v2059_v19 = vld [vmem:[%s1803_s11 + $0x22] sm:$0xff] }
  0x66   : > { %v804_v45 = vadd.f32 %v788_v0, %v767_v23  ;;  %v580_v5 = vadd.f32 %v564_v39, %v542_v46  ;;  %v658_v6 = vmul.f32 %v1887_v29, %v2018_v40  ;;  %v496_v8 = vmul.f32 %v1857_v17, %v2021_v43  ;;  %2471 = vst [vmem:[#allocation14_spill] sm:$0xff] %v2054_v10  ;;  %v2066_v23 = vld [vmem:[%s1803_s11 + $0x81] sm:$0xff] }
  0x67   : > { %v718_v15 = vadd.f32 %v702_v24, %v681_v56  ;;  %v572_v21 = vmul.f32 %v1872_v22, %v2033_v55  ;;  %v833_v27 = vmul.f32 %v1944_v53, %v2026_v25  ;;  %v695_v24 = vmul.f32 %v1896_v34, %v2046_v63  ;;  %v2075_v31 = vld [vmem:[%s1803_s11 + $0x48] sm:$0xff]  ;;  %v2078_v39 = vld [vmem:[%s1803_s11 + $0x3a] sm:$0xff] }
  0x68   : > { %v841_v0 = vadd.f32 %v825_v2, %v804_v45  ;;  %1385 = vmatpush3.bf16.msra.mxu0 %v1889_v30  ;;  %1407 = vmatpush3.bf16.msra.mxu1 %v1889_v30  ;;  %v534_v2 = vmul.f32 %v1862_v18, %v2030_v54  ;;  %v637_v30 = vadd.f32 %v621_v51, %v580_v5  ;;  %v2082_v56 = vld [vmem:[%s1803_s11 + $0x99] sm:$0xff] }
  0x69   : > { %1387 = vmatprep.subr.bf16.mxu0 %v1898_v35  ;;  %1400 = vmatprep.subr.bf16.mxu1 %v1898_v35  ;;  %v775_v32 = vadd.f32 %v759_v33, %v718_v15  ;;  %v752_v45 = vmul.f32 %v1913_v41, %v727_v7  ;;  %v629_v51 = vmul.f32 %v1882_v28, %v2054_v10  ;;  %v2095_v15 = vld [vmem:[%s1803_s11 + $0x6a] sm:$0xff] }
  0x6a   : > { %1338 = vmatprep.mubr.f32.mxu0 %v841_v0  ;;  %v550_v46 = vadd.f32 %v534_v2, %v496_v8  ;;  %v674_v5 = vadd.f32 %v658_v6, %v637_v30  ;;  %v789_v26 = vmul.f32 %v1939_v52, %v2059_v19  ;;  %v666_v0 = vmul.f32 %v1887_v29, %v2066_v23  ;;  %v2100_v2 = vld [vmem:[%s1803_s11 + $0x49] sm:$0xff] }
  0x6b   : > { %v543_v33 = vadd.f32 %v1916_v42, %v1903_v37  ;;  %v812_v7 = vadd.f32 %v796_v61, %v775_v32  ;;  %2472 = vst [vmem:[#allocation15_spill] sm:$0xff] %v2095_v15  ;;  %v565_v6 = vmul.f32 %v1872_v22, %v2075_v31  ;;  %v2103_v30 = vld [vmem:[%s1803_s11 + $0xa8] sm:$0xff]  ;;  %v703_v42 = vmul.f32 %v1896_v34, %v2082_v56 }
  0x6c   : > { %1389 = vmatpush3.bf16.msra.mxu0 %v1898_v35  ;;  %1408 = vmatpush3.bf16.msra.mxu1 %v1898_v35  ;;  %v588_v8 = vadd.f32 %v572_v21, %v550_v46  ;;  %v711_v37 = vadd.f32 %v695_v24, %v674_v5  ;;  %v826_v35 = vmul.f32 %v1944_v53, %v2078_v39 }
  0x6d   : > { %1391 = vmatprep.subr.bf16.mxu0 %v1900_v36  ;;  %1401 = vmatprep.subr.bf16.mxu1 %v1900_v36  ;;  %v849_v61 = vadd.f32 %v833_v27, %v812_v7  ;;  %v581_v32 = vadd.f32 %v565_v6, %v543_v33  ;;  %v497_v46 = vmul.f32 %v1857_v17, %v1927_v48  ;;  %v2128_v33 = vld [vmem:[%s1803_s11 + $0x9a] sm:$0xff]  ;;  %v2133_v6 = vld [vmem:[%s1803_s11 + $0xa9] sm:$0xff] }
  0x6e   : > { %v645_v21 = vadd.f32 %v629_v51, %v588_v8  ;;  %v768_v10 = vadd.f32 %v752_v45, %v711_v37  ;;  %v760_v24 = vmul.f32 %v1913_v41, %v2095_v15  ;;  %v696_v5 = vmul.f32 %v1896_v34, %v2100_v2 }
  0x6f   : > { %v573_v27 = vmul.f32 %v1872_v22, %v2103_v30  ;;  %v638_v45 = vadd.f32 %v1919_v44, %v581_v32  ;;  %v551_v7 = vadd.f32 %v1983_v11, %v497_v46  ;;  %1350 = vmatprep.mubr.f32.mxu1 %v849_v61  ;;  %v490_v37 = vmul.f32 %v1857_v17, %v1978_v9 }
  0x70   : > { %1393 = vmatpush3.bf16.msra.mxu0 %v1900_v36  ;;  %1409 = vmatpush3.bf16.msra.mxu1 %v1900_v36  ;;  %v682_v51 = vadd.f32 %v666_v0, %v645_v21  ;;  %v805_v8 = vadd.f32 %v789_v26, %v768_v10  ;;  %v528_v15 = vmul.f32 %v1862_v18, %v1993_v14  ;;  %v2145_v26 = vld [vmem:[%s1803_s11 + $0x4a] sm:$0xff] }
  0x71   : > { %v566_v36 = vmul.f32 %v1872_v22, %v2114_v3  ;;  %v797_v44 = vmul.f32 %v1939_v52, %v2117_v60  ;;  %v675_v11 = vadd.f32 %v1933_v50, %v638_v45  ;;  %v589_v10 = vadd.f32 %v573_v27, %v551_v7  ;;  %v2155_v50 = vld [vmem:[%s1803_s11 + $0x51] sm:$0xff] }
  0x72   : > { %v719_v0 = vadd.f32 %v703_v42, %v682_v51  ;;  %v842_v61 = vadd.f32 %v826_v35, %v805_v8  ;;  %v834_v9 = vmul.f32 %v1944_v53, %v2128_v33  ;;  %v544_v21 = vadd.f32 %v528_v15, %v490_v37  ;;  %v2158_v45 = vld [vmem:[%s1803_s11 + $0xb0] sm:$0xff] }
  0x73   : > { %v623_v32 = vmul.f32 %v1882_v28, %v2018_v40  ;;  %v712_v48 = vadd.f32 %v696_v5, %v675_v11  ;;  %v646_v42 = vadd.f32 %v1987_v12, %v589_v10  ;;  %v704_v51 = vmul.f32 %v1896_v34, %v2133_v6  ;;  %v2169_v7 = vld [vmem:[%s1803_s11 + $0xaa] sm:$0xff] }
  0x74   : > { %v776_v46 = vadd.f32 %v760_v24, %v719_v0  ;;  %1339 = vmatmul.mubr.f32.vlgmr.msra.gmra.mrb[0].mxu0 %v842_v61  ;;  %v827_v35 = vmul.f32 %v1944_v53, %v2145_v26  ;;  %v582_v15 = vadd.f32 %v566_v36, %v544_v21  ;;  %v660_v27 = vmul.f32 %v1887_v29, %v2046_v63 }
  0x75   : > { %v498_v40 = vmul.f32 %v1857_v17, %v2030_v54  ;;  %v769_v12 = vadd.f32 %v1954_v59, %v712_v48  ;;  %v683_v5 = vadd.f32 %v2001_v20, %v646_v42  ;;  %v536_v8 = vmul.f32 %v1862_v18, %v2033_v55  ;;  %v2192_v42 = vld [vmem:[%s1803_s11 + $0xb1] sm:$0xff] }
  0x76   : > { %v813_v24 = vadd.f32 %v797_v44, %v776_v46  ;;  %v639_v37 = vadd.f32 %v623_v32, %v582_v15  ;;  %v697_v36 = vmul.f32 %v1896_v34, %v2155_v50  ;;  %v574_v0 = vmul.f32 %v1872_v22, %v2158_v45  ;;  %v2187_v32 = vld [vmem:[%s1803_s11 + $0x52] sm:$0xff] }
  0x77   : > { %v631_v44 = vmul.f32 %v1882_v28, %v2066_v23  ;;  %v806_v48 = vadd.f32 %v1964_v1, %v769_v12  ;;  %v720_v59 = vadd.f32 %v704_v51, %v683_v5  ;;  %v552_v20 = vadd.f32 %v536_v8, %v498_v40 }
  0x78   : > { %v850_v11 = vadd.f32 %v834_v9, %v813_v24  ;;  %v2182_v10 = vmul.f32 %v1913_v41, %v2026_v25  ;;  %v835_v61 = vmul.f32 %v1944_v53, %v2169_v7  ;;  %v676_v21 = vadd.f32 %v660_v27, %v639_v37  ;;  %v2204_v24 = vld [vmem:[%s1803_s11 + $0xc0] sm:$0xff] }
  0x79   : > { %v754_v46 = vmul.f32 %v1913_v41, %v2059_v19  ;;  %v843_v1 = vadd.f32 %v827_v35, %v806_v48  ;;  %v777_v9 = vadd.f32 %v2037_v57, %v720_v59  ;;  %v590_v51 = vadd.f32 %v574_v0, %v552_v20  ;;  %v2221_v20 = vld [vmem:[%s1803_s11 + $0xb2] sm:$0xff] }
  0x7a   : > { %1351 = vmatmul.mubr.f32.vlgmr.msra.gmra.mrb[0].mxu1 %v850_v11  ;;  %v668_v25 = vmul.f32 %v1887_v29, %v2082_v56  ;;  %v713_v15 = vadd.f32 %v697_v36, %v676_v21  ;;  %v791_v40 = vmul.f32 %v1939_v52, %v2078_v39  ;;  %v529_v27 = vmul.f32 %v1862_v18, %v2075_v31 }
  0x7b   : > { %v567_v19 = vmul.f32 %v1872_v22, %v1924_v47  ;;  %1341 = vmatprep.mubr.f32.mxu0 %v843_v1  ;;  %v814_v57 = vadd.f32 %v2043_v62, %v777_v9  ;;  %v828_v35 = vmul.f32 %v1944_v53, %v2187_v32  ;;  %v647_v12 = vadd.f32 %v631_v44, %v590_v51  ;;  %v2227_v1 = vld [vmem:[%s1803_s11 + $0xc1] sm:$0xff] }
  0x7c   : > { %v705_v5 = vmul.f32 %v1896_v34, %v2192_v42  ;;  %v770_v8 = vadd.f32 %v754_v46, %v713_v15  ;;  %v762_v37 = vmul.f32 %v1913_v41, %v2117_v60  ;;  %v545_v36 = vadd.f32 %v529_v27, %v1906_v38 }
  0x7d   : > { %v537_v0 = vmul.f32 %v1862_v18, %v2103_v30  ;;  %v851_v11 = vadd.f32 %v835_v61, %v814_v57  ;;  %v684_v48 = vadd.f32 %v668_v25, %v647_v12  ;;  %v799_v62 = vmul.f32 %v1939_v52, %v2128_v33 }
  0x7e   : > { %v575_v44 = vmul.f32 %v1872_v22, %v2204_v24  ;;  %v807_v59 = vadd.f32 %v791_v40, %v770_v8  ;;  %v583_v21 = vadd.f32 %v567_v19, %v545_v36  ;;  %v661_v46 = vmul.f32 %v1887_v29, %v2100_v2  ;;  %v2248_v36 = vld [vmem:[%s1803_s11 + $0xc8] sm:$0xff] }
  0x7f   : > { %v553_v38 = vadd.f32 %v537_v0, %v1971_v4  ;;  %1353 = vmatprep.mubr.f32.mxu1 %v851_v11  ;;  %v721_v61 = vadd.f32 %v705_v5, %v684_v48  ;;  %v698_v9 = vmul.f32 %v1896_v34, %v1951_v58  ;;  %v669_v51 = vmul.f32 %v1887_v29, %v2133_v6 }
  0x80   : > { %v492_v25 = vmul.f32 %v1857_v17, %v1993_v14  ;;  %v844_v15 = vadd.f32 %v828_v35, %v807_v59  ;;  %v640_v40 = vadd.f32 %v1930_v49, %v583_v21  ;;  %v530_v4 = vmul.f32 %v1862_v18, %v2114_v3  ;;  %v2257_v21 = vld [vmem:[%s1803_s11 + $0xc2] sm:$0xff] }
  0x81   : > { %v591_v27 = vadd.f32 %v575_v44, %v553_v38  ;;  %v778_v19 = vadd.f32 %v762_v37, %v721_v61  ;;  %v836_v57 = vmul.f32 %v1944_v53, %v2221_v20  ;;  %v706_v12 = vmul.f32 %v1896_v34, %v2227_v1 }
  0x82   : > { %v568_v5 = vmul.f32 %v1872_v22, %v2021_v43  ;;  %1342 = vmatmul.mubr.f32.gmra.mrb[2].mxu0 %v844_v15  ;;  %v677_v14 = vadd.f32 %v661_v46, %v640_v40  ;;  %v546_v49 = vadd.f32 %v530_v4, %v492_v25  ;;  %v625_v8 = vmul.f32 %v1882_v28, %v2046_v63  ;;  %v2473_v25 = vld [vmem:[#allocation11_spill] sm:$0xff]  ;;  %v2474_v40 = vld [vmem:[#allocation14_spill] sm:$0xff] }
  0x83   : > { %v648_v35 = vadd.f32 %v1996_v16, %v591_v27  ;;  %v815_v37 = vadd.f32 %v799_v62, %v778_v19  ;;  %v792_v0 = vmul.f32 %v1939_v52, %v2145_v26  ;;  %v829_v11 = vmul.f32 %v1944_v53, %v1990_v13 }
  0x84   : > { %v662_v48 = vmul.f32 %v1887_v29, %v2155_v50  ;;  %v714_v44 = vadd.f32 %v698_v9, %v677_v14  ;;  %v584_v16 = vadd.f32 %v568_v5, %v546_v49  ;;  %v500_v63 = vmul.f32 %v1857_v17, %v2033_v55 }
  0x85   : > { %v685_v59 = vadd.f32 %v669_v51, %v648_v35  ;;  %v852_v46 = vadd.f32 %v836_v57, %v815_v37  ;;  %v800_v62 = vmul.f32 %v1939_v52, %v2169_v7  ;;  %v538_v38 = vmul.f32 %v1862_v18, %v2158_v45  ;;  %v2278_v35 = vld [vmem:[%s1803_s11 + $0xc9] sm:$0xff] }
  0x86   : > { %v576_v61 = vmul.f32 %v1872_v22, %v2248_v36  ;;  %v771_v9 = vadd.f32 %v2473_v25, %v714_v44  ;;  %v641_v15 = vadd.f32 %v625_v8, %v584_v16  ;;  %v699_v27 = vmul.f32 %v1896_v34, %v2474_v40  ;;  %v2475_v44 = vld [vmem:[#allocation10_spill] sm:$0xff]  ;;  %v2476_v25 = vld [vmem:[#allocation15_spill] sm:$0xff] }
  0x87   : > { %v722_v51 = vadd.f32 %v706_v12, %v685_v59  ;;  %1354 = vmatmul.mubr.f32.gmra.mrb[2].mxu1 %v852_v46  ;;  %v837_v55 = vmul.f32 %v1944_v53, %v2257_v21  ;;  %v756_v4 = vmul.f32 %v1913_v41, %v2078_v39  ;;  %v554_v19 = vadd.f32 %v538_v38, %v500_v63  ;;  %v480_v38 = vld [vmem:[%s1803_s11 + $0xd8] sm:$0xff] }
  0x88   : > { %v633_v57 = vmul.f32 %v1882_v28, %v2082_v56  ;;  %v808_v5 = vadd.f32 %v792_v0, %v771_v9  ;;  %v678_v12 = vadd.f32 %v662_v48, %v641_v15  ;;  %v670_v49 = vmul.f32 %v1887_v29, %v2192_v42 }
  0x89   : > { %v779_v14 = vadd.f32 %v2182_v10, %v722_v51  ;;  %v592_v8 = vadd.f32 %v576_v61, %v554_v19  ;;  %v493_v37 = vmul.f32 %v1857_v17, %v2075_v31  ;;  %v531_v39 = vmul.f32 %v1862_v18, %v1924_v47 }
  0x8a   : > { %v569_v56 = vmul.f32 %v1872_v22, %v2475_v44  ;;  %v845_v0 = vadd.f32 %v829_v11, %v808_v5  ;;  %v715_v59 = vadd.f32 %v699_v27, %v678_v12  ;;  %v793_v48 = vmul.f32 %v1939_v52, %v2187_v32  ;;  %v2477_v12 = vld [vmem:[#allocation12_spill] sm:$0xff] }
  0x8b   : > { %v816_v10 = vadd.f32 %v800_v62, %v779_v14  ;;  %v649_v16 = vadd.f32 %v633_v57, %v592_v8  ;;  %v707_v63 = vmul.f32 %v1896_v34, %v2278_v35  ;;  %v547_v46 = vadd.f32 %v531_v39, %v493_v37  ;;  %v2298_v62 = vld [vmem:[%s1803_s11 + $0xca] sm:$0xff]  ;;  %v613_v37 = vld [vmem:[%s1803_s11 + $0xd9] sm:$0xff] }
  0x8c   : > { %v626_v31 = vmul.f32 %v1882_v28, %v2100_v2  ;;  %1344 = vmatprep.mubr.f32.mxu0 %v845_v0  ;;  %v772_v61 = vadd.f32 %v756_v4, %v715_v59  ;;  %v830_v11 = vmul.f32 %v1944_v53, %v2476_v25  ;;  %v764_v9 = vmul.f32 %v1913_v41, %v2128_v33 }
  0x8d   : > { %v853_v47 = vadd.f32 %v837_v55, %v816_v10  ;;  %v686_v51 = vadd.f32 %v670_v49, %v649_v16  ;;  %v585_v15 = vadd.f32 %v569_v56, %v547_v46  ;;  %v663_v27 = vmul.f32 %v1887_v29, %v1951_v58 }
  0x8e   : > { %v501_v2 = vmul.f32 %v1857_v17, %v2103_v30  ;;  %v809_v55 = vadd.f32 %v793_v48, %v772_v61  ;;  %v801_v4 = vmul.f32 %v1939_v52, %v2221_v20  ;;  %v539_v19 = vmul.f32 %v1862_v18, %v2204_v24 }
  0x8f   : > { %1356 = vmatprep.mubr.f32.mxu1 %v853_v47  ;;  %v577_v57 = vmul.f32 %v1872_v22, %v480_v38  ;;  %v723_v33 = vadd.f32 %v707_v63, %v686_v51  ;;  %v838_v5 = vmul.f32 %v1944_v53, %v2298_v62  ;;  %v642_v14 = vadd.f32 %v626_v31, %v585_v15  ;;  %v2478_v63 = vld [vmem:[#allocation13_spill] sm:$0xff] }
  0x90   : > { %v700_v58 = vmul.f32 %v1896_v34, %v2477_v12  ;;  %v846_v49 = vadd.f32 %v830_v11, %v809_v55  ;;  %v757_v30 = vmul.f32 %v1913_v41, %v2145_v26  ;;  %v555_v8 = vadd.f32 %v539_v19, %v501_v2  ;;  %v744_v51 = vld [vmem:[%s1803_s11 + $0xda] sm:$0xff] }
  0x91   : > { %v634_v24 = vmul.f32 %v1882_v28, %v2133_v6  ;;  %v780_v39 = vadd.f32 %v764_v9, %v723_v33  ;;  %v679_v44 = vadd.f32 %v663_v27, %v642_v14  ;;  %v794_v56 = vmul.f32 %v1939_v52, %v1990_v13 }
  0x92   : > { %v494_v0 = vmul.f32 %v1857_v17, %v2114_v3  ;;  %1345 = vmatmul.mubr.f32.gmra.mrb[4].mxu0 %v846_v49  ;;  %v593_v10 = vadd.f32 %v577_v57, %v555_v8  ;;  %v671_v59 = vmul.f32 %v1887_v29, %v2227_v1  ;;  %v532_v26 = vmul.f32 %v1862_v18, %v2021_v43  ;;  %v481_v3 = vld [vmem:[%s1803_s11 + $0xe0] sm:$0xff] }
  0x93   : > { %v570_v6 = vmul.f32 %v1872_v22, %v2030_v54  ;;  %v817_v48 = vadd.f32 %v801_v4, %v780_v39  ;;  %v716_v16 = vadd.f32 %v700_v58, %v679_v44  ;;  %v831_v13 = vmul.f32 %v1944_v53, %v2478_v63 }
  0x94   : > { %v708_v46 = vmul.f32 %v1896_v34, %v613_v37  ;;  %v650_v31 = vadd.f32 %v634_v24, %v593_v10  ;;  %v765_v38 = vmul.f32 %v1913_v41, %v2169_v7  ;;  %v548_v1 = vadd.f32 %v532_v26, %v494_v0  ;;  %v745_v37 = vld [vmem:[%s1803_s11 + $0xe2] sm:$0xff] }
  0x95   : > { %v627_v43 = vmul.f32 %v1882_v28, %v2155_v50  ;;  %v854_v47 = vadd.f32 %v838_v5, %v817_v48  ;;  %v773_v61 = vadd.f32 %v757_v30, %v716_v16  ;;  %v664_v54 = vmul.f32 %v1887_v29, %v2474_v40 }
  0x96   : > { %v502_v11 = vmul.f32 %v1857_v17, %v2158_v45  ;;  %v687_v9 = vadd.f32 %v671_v59, %v650_v31  ;;  %v586_v15 = vadd.f32 %v570_v6, %v548_v1  ;;  %v540_v27 = vmul.f32 %v1862_v18, %v2248_v36 }
  0x97   : > { %v578_v7 = vmul.f32 %v1872_v22, %v481_v3  ;;  %1357 = vmatmul.mubr.f32.gmra.mrb[4].mxu1 %v854_v47  ;;  %v810_v2 = vadd.f32 %v794_v56, %v773_v61  ;;  %v802_v50 = vmul.f32 %v1939_v52, %v2257_v21  ;;  %v701_v40 = vmul.f32 %v1896_v34, %v2066_v23  ;;  %v614_v22 = vld [vmem:[%s1803_s11 + $0xe1] sm:$0xff]  ;;  %s1489_s11 = scalar_lea.vmem %s1488_s9, 4096 }
  0x98   : > { %v724_v55 = vadd.f32 %v708_v46, %v687_v9  ;;  %v643_v4 = vadd.f32 %v627_v43, %v586_v15  ;;  %v556_v17 = vadd.f32 %v540_v27, %v502_v11  ;;  %v635_v45 = vmul.f32 %v1882_v28, %v2192_v42  ;;  %p1491_p7 = scmp.lt.s32.totalorder %s1489_s11, %s1483_s8 }
  0x99   : > { %v847_v19 = vadd.f32 %v831_v13, %v810_v2  ;;  %v839_v57 = vmul.f32 %v1944_v53, %v744_v51  ;;  %v758_v18 = vmul.f32 %v1913_v41, %v2187_v32  ;;  %v672_v23 = vmul.f32 %v1887_v29, %v2278_v35 }
  0x9a   : > { %v781_v36 = vadd.f32 %v765_v38, %v724_v55  ;;  %v680_v33 = vadd.f32 %v664_v54, %v643_v4  ;;  %v594_v21 = vadd.f32 %v578_v7, %v556_v17  ;;  %v795_v5 = vmul.f32 %v1939_v52, %v2476_v25  ;;  %p1492_p9 = por %p1491_p7, %p1490_p6 }
  0x9b   : > { %1347 = vmatprep.mubr.f32.mxu0 %v847_v19  ;;  %v709_v12 = vmul.f32 %v1896_v34, %v614_v22  ;;  %v832_v32 = vmul.f32 %v1944_v53, %v2117_v60  ;;  %v766_v8 = vmul.f32 %v1913_v41, %v2221_v20  ;;  %v803_v25 = vmul.f32 %v1939_v52, %v2298_v62  ;;  %v1263_v41 = vld [vmem:[%s2455_s3] ss:$0 sm:$0xff] }
  0x9c   : > { %v818_v14 = vadd.f32 %v802_v50, %v781_v36  ;;  %v717_v28 = vadd.f32 %v701_v40, %v680_v33  ;;  %v651_v42 = vadd.f32 %v635_v45, %v594_v21  ;;  %v840_v39 = vmul.f32 %v1944_v53, %v745_v37  ;;  %p1493_p10 = pnand %p1492_p9, %p1486_p5 }
  0x9e   : > { %v855_v58 = vadd.f32 %v839_v57, %v818_v14  ;;  %v774_v49 = vadd.f32 %v758_v18, %v717_v28  ;;  %v688_v30 = vadd.f32 %v672_v23, %v651_v42 }
  0xa0   : > { %1359 = vmatprep.mubr.f32.mxu1 %v855_v58  ;;  %v811_v29 = vadd.f32 %v795_v5, %v774_v49  ;;  %v725_v35 = vadd.f32 %v709_v12, %v688_v30 }
  0xa2   : > { %v848_v24 = vadd.f32 %v832_v32, %v811_v29  ;;  %v782_v34 = vadd.f32 %v766_v8, %v725_v35 }
  0xa4   : > { %1348 = vmatmul.mubr.f32.gmra.mrb[6].mxu0 %v848_v24  ;;  %v819_v60 = vadd.f32 %v803_v25, %v782_v34 }
  0xa6   : > { %v856_v44 = vadd.f32 %v840_v39, %v819_v60 }
  0xa8   : > { %1360 = vmatmul.mubr.f32.gmra.mrb[6].mxu1 %v856_v44 }
 0x147   : > { %v1340_v20 = vpop.f32.mrb[0].mxu0 }
 0x148   : > { %v952_v56 = vadd.f32 %v1340_v20, %v1263_v41  ;;  %v946_v0 = vpop.f32.mrb[1].mxu0 }
 0x149   : > { %v947_v52 = vadd.f32 %v1263_v41, %v946_v0 }
 0x14a   : > { %1026 = vst [vmem:[%s1688_s23 + $0x8] sm:$0xff] %v952_v56 }
 0x14b   : > { %1025 = vst [vmem:[%s1688_s23] sm:$0xff] %v947_v52 }
 0x14d   : > { %v1352_v62 = vpop.f32.mrb[0].mxu1 }
 0x14e   : > { %v992_v53 = vadd.f32 %v1352_v62, %v1263_v41  ;;  %v986_v10 = vpop.f32.mrb[1].mxu1 }
 0x14f   : > { %v987_v59 = vadd.f32 %v1263_v41, %v986_v10 }
 0x150   : > { %1034 = vst [vmem:[%s1688_s23 + $0x48] sm:$0xff] %v992_v53 }
 0x151   : > { %1033 = vst [vmem:[%s1688_s23 + $0x40] sm:$0xff] %v987_v59 }
 0x155   : > { %v1343_v26 = vpop.f32.mrb[2].mxu0 }
 0x156   : > { %v962_v6 = vadd.f32 %v1343_v26, %v1263_v41  ;;  %v956_v48 = vpop.f32.mrb[3].mxu0 }
 0x157   : > { %v957_v16 = vadd.f32 %v1263_v41, %v956_v48 }
 0x158   : > { %1028 = vst [vmem:[%s1688_s23 + $0x18] sm:$0xff] %v962_v6 }
 0x159   : > { %1027 = vst [vmem:[%s1688_s23 + $0x10] sm:$0xff] %v957_v16 }
 0x15a   : > { %v1355_v63 = vpop.f32.mrb[2].mxu1 }
 0x15b   : > { %v1002_v13 = vadd.f32 %v1355_v63, %v1263_v41  ;;  %v996_v46 = vpop.f32.mrb[3].mxu1 }
 0x15c   : > { %v997_v3 = vadd.f32 %v1263_v41, %v996_v46 }
 0x15d   : > { %1036 = vst [vmem:[%s1688_s23 + $0x58] sm:$0xff] %v1002_v13 }
 0x15e   : > { %1035 = vst [vmem:[%s1688_s23 + $0x50] sm:$0xff] %v997_v3 }
 0x165   : > { %v1346_v31 = vpop.f32.mrb[4].mxu0 }
 0x166   : > { %v972_v38 = vadd.f32 %v1346_v31, %v1263_v41  ;;  %v966_v1 = vpop.f32.mrb[5].mxu0 }
 0x167   : > { %v967_v43 = vadd.f32 %v1263_v41, %v966_v1 }
 0x168   : > { %1030 = vst [vmem:[%s1688_s23 + $0x28] sm:$0xff] %v972_v38 }
 0x169   : > { %1029 = vst [vmem:[%s1688_s23 + $0x20] sm:$0xff] %v967_v43 }
 0x16a   : > { %v1358_v47 = vpop.f32.mrb[4].mxu1 }
 0x16b   : > { %v1012_v61 = vadd.f32 %v1358_v47, %v1263_v41  ;;  %v1006_v54 = vpop.f32.mrb[5].mxu1 }
 0x16c   : > { %v1007_v11 = vadd.f32 %v1263_v41, %v1006_v54 }
 0x16d   : > { %1038 = vst [vmem:[%s1688_s23 + $0x68] sm:$0xff] %v1012_v61 }
 0x16e   : > { %1037 = vst [vmem:[%s1688_s23 + $0x60] sm:$0xff] %v1007_v11 }
 0x177   : > { %v1349_v9 = vpop.f32.mrb[6].mxu0 }
 0x178   : > { %v982_v51 = vadd.f32 %v1349_v9, %v1263_v41  ;;  %v976_v15 = vpop.f32.mrb[7].mxu0 }
 0x179   : > { %v977_v27 = vadd.f32 %v1263_v41, %v976_v15 }
 0x17a   : > { %1032 = vst [vmem:[%s1688_s23 + $0x38] sm:$0xff] %v982_v51 }
 0x17b   : > { %v1361_v7 = vpop.f32.mrb[6].mxu1  ;;  %1031 = vst [vmem:[%s1688_s23 + $0x30] sm:$0xff] %v977_v27 }
 0x17c   : > { %v1022_v2 = vadd.f32 %v1361_v7, %v1263_v41  ;;  %v1016_v50 = vpop.f32.mrb[7].mxu1 }
 0x17d   : > { %v1017_v40 = vadd.f32 %v1263_v41, %v1016_v50 }
 0x17e   : > { %1040 = vst [vmem:[%s1688_s23 + $0x78] sm:$0xff] %v1022_v2 }
 0x17f   : > { %1039 = vst [vmem:[%s1688_s23 + $0x70] sm:$0xff] %v1017_v40 }
 0x180   : > { %1496 = shalt.err (!%p1493_p10)
}
 0x181   : > { %s1497_s23 = scalar_lea.hbm %s2392_s18, 2048  ;;  %s1501_s10 = scalar_lea.hbm %s2456_s4, 8192 }
 0x182   : > { %p1498_p11 = scmp.ne.s32.totalorder %s2392_s18, %s1497_s23  ;;  %p1502_p0 = scmp.lt.u32.totalorder %s2392_s18, %s2456_s4 }
 0x183   : > { %p1503_p1 = scmp.lt.u32.totalorder %s1501_s10, %s1497_s23  ;;  %p1505_p4 = scmp.lt.u32.totalorder %s1497_s23, %s2392_s18 }
 0x184   : > { %p1499_p12 = pnand %p1498_p11, %p1660_p3 }
 0x185   : > { %p1504_p2 = por %p1503_p1, %p1502_p0 }
 0x186   : > { %p1500_p13 = pneg %p1499_p12 }
 0x187   : > { %p1506_p5 = por %p1505_p4, %p1504_p2 }
 0x189   : > { %p1507_p6 = pnand %p1506_p5, %p1500_p13 }
 0x18b   : > { %1510 = shalt.err (!%p1507_p6)
}
 0x18c   : > { %s1582_s27 = smov 128   ;;  %s1583_s19 = smov 8  }
 0x18d   : > { %1410 = dma.vmem_to_hbm [thread:$0]  (%p1660_p3), %s2394_s13, 2048, %s2392_s18, %s2400_s30, %s1582_s27, %s1582_s27, %s1583_s19  }
 0x18e PF: > { %p1416_p7 = scmp.ge.s32.totalorder %s1579_s22, 2  ;;  %s1073_s8 = sand.u32 1, %s1551_s15  }
 0x18f   : > { %s1074_s5 = scalar_lea.sflag [#allocation5], %s1073_s8 }
 0x190   : > { %p1413_p9 = pnand %p1416_p7, %p1669_p8 }
 0x192   : > { %1546 = dma.done.wait (!%p1413_p9), %s1074_s5, 2048  }
 0x193   : > { %1548 = vsyncadd (!%p1413_p9), %s1074_s5, 4294965248  ;;  %s17_s22 = sadd.s32 1, %s1579_s22   ;;  %s2480_s15 = smov %s1555_s16 }
 0x194   : > { %p14_p10 = scmp.ge.s32.totalorder %s17_s22, 6   ;;  %s2481_s16 = smov %s1559_s17 }
 0x195   : > { %s2482_s17 = smov %s1678_s7  ;;  %s2483_s18 = smov %s1571_s20 }
 0x196   : > { %s2484_s19 = smov %s1575_s21  ;;  %s2485_s20 = smov %s2488_s25 }
 0x197   : > { %s2486_s21 = smov %s2492_s26  ;;  %16 = sbr.rel (!%p14_p10) target bundleno = 5 (0x5), region = 183 }
 0x19e   :  { %1079 = vsyncpa [#allocation5], 1 }
 0x19f   :  { %1081 = vsyncpa [#allocation5 + $0x1], 1 }
 0x1a0   :  { %1082 = vsyncmov [#allocation3] }
 0x1a3   :  { %s1083_s28 = vpop.sfrf %1082 }
 0x1a4   :  { %p1271_p3 = scmp.ne.s32.totalorder %s1083_s28, 0 }
 0x1a6   :  { %1087 = shalt.err (%p1271_p3)  }
 0x1a7   :  { %1089 = vsyncmov [#allocation3 + $0x1] }
 0x1aa   :  { %s1090_s29 = vpop.sfrf %1089 }
 0x1ab   :  { %p1272_p8 = scmp.ne.s32.totalorder %s1090_s29, 0 }
 0x1ad   :  { %1094 = shalt.err (%p1272_p8)  }

</bundles_post_ra>
